<compile_context>
chip_gen: v7x
topology: tpu7x:2x2x1
jax: 0.10.0
libtpu: 0.0.40
codegen_flags: <defaults>
</compile_context>

<pallas_src>
import math

import numpy as np

import jax
import jax.numpy as jnp
from jax.experimental import pallas as pl
from jax.experimental.pallas import tpu as pltpu

# ------------------------------- config --------------------------------------
N_BATCH = 2
IMG_H = IMG_W = 32
C_IN = 3
C1 = 16            # conv1 out channels
C2 = 16            # conv2 out channels
CC = 8             # n_concat_features
GROUPS = 4         # n_gwc_groups
CG = 16            # gwc feature channels (CG % GROUPS == 0)
CPG = CG // GROUPS
D_BINS = 8         # cv_bins (at 1/4 resolution)
HM = 16            # matcher hidden channels
H2 = IMG_H // 2
W2 = IMG_W // 2
H4 = IMG_H // 4
W4 = IMG_W // 4
P4 = H4 * W4       # 64 pixels at 1/4 res
P2 = H2 * W2       # 256 pixels at 1/2 res
K1PAD = 32         # conv1 im2col K (27) padded to 32 for aligned loads


# --------------------- precomputed structural matrices -----------------------
def _conv2_select_np():
    """(9*P4, P2) 0/1: row (t*P4+o) selects conv2 input pixel for tap t, out o."""
    S = np.zeros((9 * P4, P2), np.float32)
    for t in range(9):
        ki, kj = divmod(t, 3)
        for oh in range(H4):
            for ow in range(W4):
                ih, iw = 2 * oh + ki - 1, 2 * ow + kj - 1
                if 0 <= ih < H2 and 0 <= iw < W2:
                    S[t * P4 + oh * W4 + ow, ih * W2 + iw] = 1.0
    return S


def _shift_mask_np():
    """Disparity shift (right feats) and mask (left feats), both (D*P4, P4)."""
    Sh = np.zeros((D_BINS * P4, P4), np.float32)
    Mk = np.zeros((D_BINS * P4, P4), np.float32)
    for d in range(D_BINS):
        for h in range(H4):
            for w in range(W4):
                r = d * P4 + h * W4 + w
                if w >= d:
                    Mk[r, h * W4 + w] = 1.0          # keep left pixel in place
                    Sh[r, h * W4 + (w - d)] = 1.0    # right pixel shifted by d
    return Sh, Mk


def _avg_mat_np():
    """(CG, GROUPS) block-averaging matrix for the GWC group-mean."""
    A = np.zeros((CG, GROUPS), np.float32)
    for g in range(GROUPS):
        A[g * CPG:(g + 1) * CPG, g] = 1.0 / CPG
    return A


def _upsample_mats_np():
    """x4 bilinear (align_corners=True, as in the reference) row/col matrices."""
    def up(n_in, n_out):
        src = np.arange(n_out, dtype=np.float64) * (n_in - 1) / (n_out - 1)
        lo = np.clip(np.floor(src).astype(np.int64), 0, n_in - 2)
        frac = src - lo
        A = np.zeros((n_out, n_in), np.float64)
        A[np.arange(n_out), lo] += 1.0 - frac
        A[np.arange(n_out), lo + 1] += frac
        return A.astype(np.float32)
    return up(H4, IMG_H), up(W4, IMG_W)


# Transposed structural matrices for the pixels-in-lanes layout.
_G2 = _conv2_select_np().T                 # (P2, 9*P4)   conv2 gather (right-mul)
_SH_NP, _MK_NP = _shift_mask_np()
_SHIFT_T = _SH_NP.T                        # (P4, D*P4)   right-feature shift
_MASK_T = _MK_NP.T                         # (P4, D*P4)   left-feature mask
_AVG_MAT = _avg_mat_np()
_AH, _AW = _upsample_mats_np()             # (32, 8) each, used in XLA


# ------------------------------ fused kernel ---------------------------------
def _bdot(a, b):
    """bf16-operand MXU matmul with f32 accumulation."""
    return jnp.dot(a.astype(jnp.bfloat16), b.astype(jnp.bfloat16),
                   preferred_element_type=jnp.float32)


def _fused_kernel(p_ref, w1_ref, g2_ref, w2t_ref, wh_ref, mk_ref, sh_ref,
                  w1f_ref, b1_ref, w2c_ref, o_ref):
    # ---- conv1 for L and R in ONE dot (block-diagonal transposed weight) ----
    # rows [0:C1) = left channels, [C1:2*C1) = right channels; 256 lanes.
    y1 = jnp.maximum(_bdot(w1_ref[...], p_ref[0]), 0.0)          # (32, P2) f32

    # ---- conv2: one gather matmul (taps in d-major columns), then 9 taps -----
    g = _bdot(y1, g2_ref[...])                                   # (32, 9*P4) f32
    # TODO(synk): on v7x fuse these 9 pushes into one K=144 dot (MRB).
    acc = _bdot(w2t_ref[0], g[:, 0:P4])
    for t in range(1, 9):
        acc = acc + _bdot(w2t_ref[t], g[:, t * P4:(t + 1) * P4])
    y2 = jnp.maximum(acc, 0.0)                                   # (32, P4) f32

    # ---- both 1x1 heads for both images in one dot: rows [gl; cl; gr; cr] ----
    heads = _bdot(wh_ref[...], y2)                               # (48, P4) f32

    # ---- cost volumes for all D_BINS disparities (columns are d*P4 + pixel) --
    lm = _bdot(heads[0:CG + CC, :], mk_ref[...])   # (24, D*P4): [gl_masked; cl_masked]
    rs = _bdot(heads[CG + CC:, :], sh_ref[...])    # (24, D*P4): [gr_shifted; cr_shifted]

    prod = lm[0:CG, :] * rs[0:CG, :]               # gwc correlation numerator (16, D*P4)
    x = jnp.concatenate([prod, lm[CG:, :], rs[CG:, :]], axis=0)  # (32, D*P4)

    # ---- matcher MLP: one K=32 dot; layer 2 as an exact f32 sublane reduce ---
    h = jnp.maximum(_bdot(w1f_ref[...], x) + b1_ref[...], 0.0)   # (HM, D*P4) f32
    scores = jnp.sum(h * w2c_ref[...], axis=0, keepdims=True)    # (1, D*P4) f32
    # b_match2 is constant over d for every pixel, so it cancels in the softmax.

    # ---- softmax disparity expectation ---------------------------------------
    # Subtracting the global max is exactly equivalent for softmax; exp runs as
    # a single 512-lane stream; the per-d reduction uses 64-lane slices of the
    # d-major column blocks.
    e = jnp.exp(scores - jnp.max(scores))                        # (1, D*P4)
    denom = e[:, 0:P4]
    num = jnp.zeros_like(denom)
    for d in range(1, D_BINS):
        ed = e[:, d * P4:(d + 1) * P4]
        denom = denom + ed
        num = num + float(d) * ed
    o_ref[0] = num / denom                                       # (1, P4) 1/4-res disparity


# ------------------------------ wrapper glue ----------------------------------
def _conv1_patches_t(x_nhwc):
    """3x3 stride-2 pad-1 im2col, transposed to (patch_dim, pixels), K 27->32."""
    b = x_nhwc.shape[0]
    xp = jnp.pad(x_nhwc, ((0, 0), (1, 1), (1, 1), (0, 0)))
    cols = [xp[:, i:i + 2 * H2 - 1:2, j:j + 2 * W2 - 1:2, :]
            for i in range(3) for j in range(3)]
    p = jnp.concatenate(cols, axis=-1)                           # (B, H2, W2, 27)
    p = jnp.pad(p, ((0, 0), (0, 0), (0, 0), (0, K1PAD - 9 * C_IN)))
    return p.reshape(b, P2, K1PAD).transpose(0, 2, 1)            # (B, K1PAD, P2)


def _prepare_operands(params):
    bf = lambda a: a.astype(jnp.bfloat16)

    # conv1: block-diagonal transposed weight (one dot covers L and R).
    w1t = jnp.pad(params["w_conv1"], ((0, K1PAD - 9 * C_IN), (0, 0))).T   # (C1, K1PAD)
    w1blk = jnp.zeros((2 * C1, 2 * K1PAD), jnp.float32)
    w1blk = w1blk.at[0:C1, 0:K1PAD].set(w1t).at[C1:, K1PAD:].set(w1t)

    # conv2: per-tap block-diagonal transposed weights (L and R share weights).
    w2 = params["w_conv2"]                                                # (9*C1, C2)
    taps = []
    for t in range(9):
        wt = w2[t * C1:(t + 1) * C1, :].T                                 # (C2, C1)
        blk = jnp.zeros((2 * C2, 2 * C1), jnp.float32)
        blk = blk.at[0:C2, 0:C1].set(wt).at[C2:, C1:].set(wt)
        taps.append(blk)
    w2taps = jnp.stack(taps, axis=0)                                      # (9, 32, 32)

    # fused 1x1 heads, row order [gl; cl; gr; cr].
    wg, wc = params["w_gwc_head"].T, params["w_cat_head"].T               # (CG,C2),(CC,C2)
    wheads = jnp.zeros((2 * (CG + CC), 2 * C2), jnp.float32)
    wheads = (wheads.at[0:CG, 0:C2].set(wg)
                    .at[CG:CG + CC, 0:C2].set(wc)
                    .at[CG + CC:2 * CG + CC, C2:].set(wg)
                    .at[2 * CG + CC:, C2:].set(wc))

    # matcher layer 1 with the gwc group-mean folded in, transposed (HM, 32).
    w1 = params["w_match1"]
    w1f = jnp.concatenate([jnp.asarray(_AVG_MAT) @ w1[:GROUPS],
                           w1[GROUPS:GROUPS + CC],
                           w1[GROUPS + CC:]], axis=0)                     # (32, HM)

    return (bf(w1blk), bf(jnp.asarray(_G2)), bf(w2taps), bf(wheads),
            bf(jnp.asarray(_MASK_T)), bf(jnp.asarray(_SHIFT_T)), bf(w1f.T),
            params["b_match1"].T.astype(jnp.float32),                     # (HM, 1)
            params["w_match2"].astype(jnp.float32))                       # (HM, 1)


def _replicated_spec(a):
    zeros = (0,) * a.ndim
    return pl.BlockSpec(a.shape, lambda b: zeros)


def simple_stereo_forward(im_left_nchw, im_right_nchw, params):
    il = jnp.transpose(im_left_nchw, (0, 2, 3, 1)).astype(jnp.float32)
    ir = jnp.transpose(im_right_nchw, (0, 2, 3, 1)).astype(jnp.float32)
    n = il.shape[0]

    # conv1 im2col (transposed) for L and R, stacked along the sublane axis.
    pat_l = _conv1_patches_t(il)                                  # (n, 32, 256)
    pat_r = _conv1_patches_t(ir)
    patches = jnp.concatenate([pat_l, pat_r], axis=1).astype(jnp.bfloat16)  # (n, 64, 256)

    ops = _prepare_operands(params)
    in_specs = ([pl.BlockSpec((1, 2 * K1PAD, P2), lambda b: (b, 0, 0))]
                + [_replicated_spec(a) for a in ops])

    # One stereo pair per grid step; "parallel" so v7x's two TCs split the batch
    # (for odd batches a second parallel axis, e.g. H-tiles, would be added).
    disp4 = pl.pallas_call(
        _fused_kernel,
        grid=(n,),
        in_specs=in_specs,
        out_specs=pl.BlockSpec((1, 1, P4), lambda b: (b, 0, 0)),
        out_shape=jax.ShapeDtypeStruct((n, 1, P4), jnp.float32),
        compiler_params=pltpu.CompilerParams(
            dimension_semantics=("parallel",),
            vmem_limit_bytes=32 * 1024 * 1024),
    )(patches, *ops)

    # x4 bilinear upsample (align_corners=True, matching the reference) and the
    # final *4 run in XLA on the 4 KB 1/4-res disparity (per review, this keeps
    # the kernel free of a narrow full-res store).
    d4 = disp4.reshape(n, H4, W4)
    up = 4.0 * jnp.einsum("hp,bpq,wq->bhw",
                          jnp.asarray(_AH), d4, jnp.asarray(_AW))
    return up.reshape(n, 1, IMG_H, IMG_W)


# ------------------------------- parameters ----------------------------------
def init_params(key):
    ks = jax.random.split(key, 6)

    def conv_w(k, shape, fan):
        # matches PyTorch init: weight ~ N(0, sqrt(2/n)), n = prod(kernel)*out_ch
        return jax.random.normal(k, shape, jnp.float32) * math.sqrt(2.0 / fan)

    p = {}
    p["w_conv1"] = conv_w(ks[0], (3 * 3 * C_IN, C1), 3 * 3 * C1)
    p["w_conv2"] = conv_w(ks[1], (3 * 3 * C1, C2), 3 * 3 * C2)
    p["w_gwc_head"] = conv_w(ks[2], (C2, CG), 1 * 1 * CG)
    p["w_cat_head"] = conv_w(ks[3], (C2, CC), 1 * 1 * CC)
    p["w_match1"] = conv_w(ks[4], (GROUPS + 2 * CC, HM), 1 * 1 * 1 * HM)
    p["b_match1"] = jnp.zeros((1, HM), jnp.float32)
    p["w_match2"] = conv_w(ks[5], (HM, 1), 1 * 1 * 1 * 1)
    p["b_match2"] = jnp.zeros((1, 1), jnp.float32)  # cancels in softmax; unused
    # TODO(synk): PyTorch conv biases keep default uniform init; set to zero here.
    return p


if __name__ == "__main__":
    key = jax.random.PRNGKey(0)
    k_im, k_par = jax.random.split(key)
    k_l, k_r = jax.random.split(k_im)
    im_left = jax.random.normal(k_l, (N_BATCH, C_IN, IMG_H, IMG_W), jnp.float32)
    im_right = jax.random.normal(k_r, (N_BATCH, C_IN, IMG_H, IMG_W), jnp.float32)
    params = init_params(k_par)

    out = jax.jit(simple_stereo_forward)(im_left, im_right, params)
    out = jax.block_until_ready(out)
    assert out.shape == (N_BATCH, 1, IMG_H, IMG_W), out.shape
    assert bool(jnp.all(jnp.isfinite(out)))
    print("KERNEL_OK")
</pallas_src>

<mosaic_0001>
module attributes {stable_mosaic.version = 11 : i64} {
  func.func @_fused_kernel(%arg0: i32, %arg1: memref<1x64x256xbf16, #tpu.memory_space<vmem>>, %arg2: memref<32x64xbf16, #tpu.memory_space<vmem>>, %arg3: memref<256x576xbf16, #tpu.memory_space<vmem>>, %arg4: memref<9x32x32xbf16, #tpu.memory_space<vmem>>, %arg5: memref<48x32xbf16, #tpu.memory_space<vmem>>, %arg6: memref<64x512xbf16, #tpu.memory_space<vmem>>, %arg7: memref<64x512xbf16, #tpu.memory_space<vmem>>, %arg8: memref<16x32xbf16, #tpu.memory_space<vmem>>, %arg9: memref<16x1xf32, #tpu.memory_space<vmem>>, %arg10: memref<16x1xf32, #tpu.memory_space<vmem>>, %arg11: memref<1x1x64xf32, #tpu.memory_space<vmem>>) attributes {dimension_semantics = [#tpu.dimension_semantics<parallel>], iteration_bounds = array<i64: 2>, scalar_prefetch = 0 : i64, scratch_operands = 0 : i64, tpu.core_type = #tpu.core_type<tc>, window_params = [{transform_indices = @transform_0, window_bounds = array<i64: 1, 64, 256>}, {pipeline_mode = #tpu.pipeline_mode<synchronous>, transform_indices = @transform_1, window_bounds = array<i64: 32, 64>}, {pipeline_mode = #tpu.pipeline_mode<synchronous>, transform_indices = @transform_2, window_bounds = array<i64: 256, 576>}, {pipeline_mode = #tpu.pipeline_mode<synchronous>, transform_indices = @transform_3, window_bounds = array<i64: 9, 32, 32>}, {pipeline_mode = #tpu.pipeline_mode<synchronous>, transform_indices = @transform_4, window_bounds = array<i64: 48, 32>}, {pipeline_mode = #tpu.pipeline_mode<synchronous>, transform_indices = @transform_5, window_bounds = array<i64: 64, 512>}, {pipeline_mode = #tpu.pipeline_mode<synchronous>, transform_indices = @transform_6, window_bounds = array<i64: 64, 512>}, {pipeline_mode = #tpu.pipeline_mode<synchronous>, transform_indices = @transform_7, window_bounds = array<i64: 16, 32>}, {pipeline_mode = #tpu.pipeline_mode<synchronous>, transform_indices = @transform_8, window_bounds = array<i64: 16, 1>}, {pipeline_mode = #tpu.pipeline_mode<synchronous>, transform_indices = @transform_9, window_bounds = array<i64: 16, 1>}, {transform_indices = @transform_10, window_bounds = array<i64: 1, 1, 64>}]} {
    %c0 = arith.constant 0 : index
    %c0_0 = arith.constant 0 : index
    %0 = vector.load %arg2[%c0, %c0_0] : memref<32x64xbf16, #tpu.memory_space<vmem>>, vector<32x64xbf16>
    %c0_1 = arith.constant 0 : index
    %c0_2 = arith.constant 0 : index
    %c0_3 = arith.constant 0 : index
    %1 = vector.load %arg1[%c0_1, %c0_2, %c0_3] : memref<1x64x256xbf16, #tpu.memory_space<vmem>>, vector<1x64x256xbf16>
    %2 = vector.shape_cast %1 : vector<1x64x256xbf16> to vector<64x256xbf16>
    %cst = arith.constant dense<0.000000e+00> : vector<32x256xf32>
    %3 = tpu.matmul %0, %2, %cst {dimension_numbers = #tpu.dot_dimension_numbers<[1], [0], [0], [1], [0, 0, 1, 1], [], []>} : vector<32x64xbf16>, vector<64x256xbf16>, vector<32x256xf32> -> vector<32x256xf32>
    %cst_4 = arith.constant 0.000000e+00 : f32
    %4 = vector.broadcast %cst_4 : f32 to vector<32x256xf32>
    %5 = arith.maximumf %3, %4 : vector<32x256xf32>
    %c0_5 = arith.constant 0 : index
    %c0_6 = arith.constant 0 : index
    %6 = vector.load %arg3[%c0_5, %c0_6] : memref<256x576xbf16, #tpu.memory_space<vmem>>, vector<256x576xbf16>
    %7 = arith.truncf %5 : vector<32x256xf32> to vector<32x256xbf16>
    %cst_7 = arith.constant dense<0.000000e+00> : vector<32x576xf32>
    %8 = tpu.matmul %7, %6, %cst_7 {dimension_numbers = #tpu.dot_dimension_numbers<[1], [0], [0], [1], [0, 0, 1, 1], [], []>} : vector<32x256xbf16>, vector<256x576xbf16>, vector<32x576xf32> -> vector<32x576xf32>
    %c0_8 = arith.constant 0 : index
    %c0_9 = arith.constant 0 : index
    %c0_10 = arith.constant 0 : index
    %9 = vector.load %arg4[%c0_8, %c0_9, %c0_10] : memref<9x32x32xbf16, #tpu.memory_space<vmem>>, vector<1x32x32xbf16>
    %10 = vector.shape_cast %9 : vector<1x32x32xbf16> to vector<32x32xbf16>
    %11 = vector.extract_strided_slice %8 {offsets = [0, 0], sizes = [32, 64], strides = [1, 1]} : vector<32x576xf32> to vector<32x64xf32>
    %12 = arith.truncf %11 : vector<32x64xf32> to vector<32x64xbf16>
    %cst_11 = arith.constant dense<0.000000e+00> : vector<32x64xf32>
    %13 = tpu.matmul %10, %12, %cst_11 {dimension_numbers = #tpu.dot_dimension_numbers<[1], [0], [0], [1], [0, 0, 1, 1], [], []>} : vector<32x32xbf16>, vector<32x64xbf16>, vector<32x64xf32> -> vector<32x64xf32>
    %c1 = arith.constant 1 : index
    %c0_12 = arith.constant 0 : index
    %c0_13 = arith.constant 0 : index
    %14 = vector.load %arg4[%c1, %c0_12, %c0_13] : memref<9x32x32xbf16, #tpu.memory_space<vmem>>, vector<1x32x32xbf16>
    %15 = vector.shape_cast %14 : vector<1x32x32xbf16> to vector<32x32xbf16>
    %16 = vector.extract_strided_slice %8 {offsets = [0, 64], sizes = [32, 64], strides = [1, 1]} : vector<32x576xf32> to vector<32x64xf32>
    %17 = arith.truncf %16 : vector<32x64xf32> to vector<32x64xbf16>
    %cst_14 = arith.constant dense<0.000000e+00> : vector<32x64xf32>
    %18 = tpu.matmul %15, %17, %cst_14 {dimension_numbers = #tpu.dot_dimension_numbers<[1], [0], [0], [1], [0, 0, 1, 1], [], []>} : vector<32x32xbf16>, vector<32x64xbf16>, vector<32x64xf32> -> vector<32x64xf32>
    %19 = arith.addf %13, %18 : vector<32x64xf32>
    %c2 = arith.constant 2 : index
    %c0_15 = arith.constant 0 : index
    %c0_16 = arith.constant 0 : index
    %20 = vector.load %arg4[%c2, %c0_15, %c0_16] : memref<9x32x32xbf16, #tpu.memory_space<vmem>>, vector<1x32x32xbf16>
    %21 = vector.shape_cast %20 : vector<1x32x32xbf16> to vector<32x32xbf16>
    %22 = vector.extract_strided_slice %8 {offsets = [0, 128], sizes = [32, 64], strides = [1, 1]} : vector<32x576xf32> to vector<32x64xf32>
    %23 = arith.truncf %22 : vector<32x64xf32> to vector<32x64xbf16>
    %cst_17 = arith.constant dense<0.000000e+00> : vector<32x64xf32>
    %24 = tpu.matmul %21, %23, %cst_17 {dimension_numbers = #tpu.dot_dimension_numbers<[1], [0], [0], [1], [0, 0, 1, 1], [], []>} : vector<32x32xbf16>, vector<32x64xbf16>, vector<32x64xf32> -> vector<32x64xf32>
    %25 = arith.addf %19, %24 : vector<32x64xf32>
    %c3 = arith.constant 3 : index
    %c0_18 = arith.constant 0 : index
    %c0_19 = arith.constant 0 : index
    %26 = vector.load %arg4[%c3, %c0_18, %c0_19] : memref<9x32x32xbf16, #tpu.memory_space<vmem>>, vector<1x32x32xbf16>
    %27 = vector.shape_cast %26 : vector<1x32x32xbf16> to vector<32x32xbf16>
    %28 = vector.extract_strided_slice %8 {offsets = [0, 192], sizes = [32, 64], strides = [1, 1]} : vector<32x576xf32> to vector<32x64xf32>
    %29 = arith.truncf %28 : vector<32x64xf32> to vector<32x64xbf16>
    %cst_20 = arith.constant dense<0.000000e+00> : vector<32x64xf32>
    %30 = tpu.matmul %27, %29, %cst_20 {dimension_numbers = #tpu.dot_dimension_numbers<[1], [0], [0], [1], [0, 0, 1, 1], [], []>} : vector<32x32xbf16>, vector<32x64xbf16>, vector<32x64xf32> -> vector<32x64xf32>
    %31 = arith.addf %25, %30 : vector<32x64xf32>
    %c4 = arith.constant 4 : index
    %c0_21 = arith.constant 0 : index
    %c0_22 = arith.constant 0 : index
    %32 = vector.load %arg4[%c4, %c0_21, %c0_22] : memref<9x32x32xbf16, #tpu.memory_space<vmem>>, vector<1x32x32xbf16>
    %33 = vector.shape_cast %32 : vector<1x32x32xbf16> to vector<32x32xbf16>
    %34 = vector.extract_strided_slice %8 {offsets = [0, 256], sizes = [32, 64], strides = [1, 1]} : vector<32x576xf32> to vector<32x64xf32>
    %35 = arith.truncf %34 : vector<32x64xf32> to vector<32x64xbf16>
    %cst_23 = arith.constant dense<0.000000e+00> : vector<32x64xf32>
    %36 = tpu.matmul %33, %35, %cst_23 {dimension_numbers = #tpu.dot_dimension_numbers<[1], [0], [0], [1], [0, 0, 1, 1], [], []>} : vector<32x32xbf16>, vector<32x64xbf16>, vector<32x64xf32> -> vector<32x64xf32>
    %37 = arith.addf %31, %36 : vector<32x64xf32>
    %c5 = arith.constant 5 : index
    %c0_24 = arith.constant 0 : index
    %c0_25 = arith.constant 0 : index
    %38 = vector.load %arg4[%c5, %c0_24, %c0_25] : memref<9x32x32xbf16, #tpu.memory_space<vmem>>, vector<1x32x32xbf16>
    %39 = vector.shape_cast %38 : vector<1x32x32xbf16> to vector<32x32xbf16>
    %40 = vector.extract_strided_slice %8 {offsets = [0, 320], sizes = [32, 64], strides = [1, 1]} : vector<32x576xf32> to vector<32x64xf32>
    %41 = arith.truncf %40 : vector<32x64xf32> to vector<32x64xbf16>
    %cst_26 = arith.constant dense<0.000000e+00> : vector<32x64xf32>
    %42 = tpu.matmul %39, %41, %cst_26 {dimension_numbers = #tpu.dot_dimension_numbers<[1], [0], [0], [1], [0, 0, 1, 1], [], []>} : vector<32x32xbf16>, vector<32x64xbf16>, vector<32x64xf32> -> vector<32x64xf32>
    %43 = arith.addf %37, %42 : vector<32x64xf32>
    %c6 = arith.constant 6 : index
    %c0_27 = arith.constant 0 : index
    %c0_28 = arith.constant 0 : index
    %44 = vector.load %arg4[%c6, %c0_27, %c0_28] : memref<9x32x32xbf16, #tpu.memory_space<vmem>>, vector<1x32x32xbf16>
    %45 = vector.shape_cast %44 : vector<1x32x32xbf16> to vector<32x32xbf16>
    %46 = vector.extract_strided_slice %8 {offsets = [0, 384], sizes = [32, 64], strides = [1, 1]} : vector<32x576xf32> to vector<32x64xf32>
    %47 = arith.truncf %46 : vector<32x64xf32> to vector<32x64xbf16>
    %cst_29 = arith.constant dense<0.000000e+00> : vector<32x64xf32>
    %48 = tpu.matmul %45, %47, %cst_29 {dimension_numbers = #tpu.dot_dimension_numbers<[1], [0], [0], [1], [0, 0, 1, 1], [], []>} : vector<32x32xbf16>, vector<32x64xbf16>, vector<32x64xf32> -> vector<32x64xf32>
    %49 = arith.addf %43, %48 : vector<32x64xf32>
    %c7 = arith.constant 7 : index
    %c0_30 = arith.constant 0 : index
    %c0_31 = arith.constant 0 : index
    %50 = vector.load %arg4[%c7, %c0_30, %c0_31] : memref<9x32x32xbf16, #tpu.memory_space<vmem>>, vector<1x32x32xbf16>
    %51 = vector.shape_cast %50 : vector<1x32x32xbf16> to vector<32x32xbf16>
    %52 = vector.extract_strided_slice %8 {offsets = [0, 448], sizes = [32, 64], strides = [1, 1]} : vector<32x576xf32> to vector<32x64xf32>
    %53 = arith.truncf %52 : vector<32x64xf32> to vector<32x64xbf16>
    %cst_32 = arith.constant dense<0.000000e+00> : vector<32x64xf32>
    %54 = tpu.matmul %51, %53, %cst_32 {dimension_numbers = #tpu.dot_dimension_numbers<[1], [0], [0], [1], [0, 0, 1, 1], [], []>} : vector<32x32xbf16>, vector<32x64xbf16>, vector<32x64xf32> -> vector<32x64xf32>
    %55 = arith.addf %49, %54 : vector<32x64xf32>
    %c8 = arith.constant 8 : index
    %c0_33 = arith.constant 0 : index
    %c0_34 = arith.constant 0 : index
    %56 = vector.load %arg4[%c8, %c0_33, %c0_34] : memref<9x32x32xbf16, #tpu.memory_space<vmem>>, vector<1x32x32xbf16>
    %57 = vector.shape_cast %56 : vector<1x32x32xbf16> to vector<32x32xbf16>
    %58 = vector.extract_strided_slice %8 {offsets = [0, 512], sizes = [32, 64], strides = [1, 1]} : vector<32x576xf32> to vector<32x64xf32>
    %59 = arith.truncf %58 : vector<32x64xf32> to vector<32x64xbf16>
    %cst_35 = arith.constant dense<0.000000e+00> : vector<32x64xf32>
    %60 = tpu.matmul %57, %59, %cst_35 {dimension_numbers = #tpu.dot_dimension_numbers<[1], [0], [0], [1], [0, 0, 1, 1], [], []>} : vector<32x32xbf16>, vector<32x64xbf16>, vector<32x64xf32> -> vector<32x64xf32>
    %61 = arith.addf %55, %60 : vector<32x64xf32>
    %cst_36 = arith.constant 0.000000e+00 : f32
    %62 = vector.broadcast %cst_36 : f32 to vector<32x64xf32>
    %63 = arith.maximumf %61, %62 : vector<32x64xf32>
    %c0_37 = arith.constant 0 : index
    %c0_38 = arith.constant 0 : index
    %64 = vector.load %arg5[%c0_37, %c0_38] : memref<48x32xbf16, #tpu.memory_space<vmem>>, vector<48x32xbf16>
    %65 = arith.truncf %63 : vector<32x64xf32> to vector<32x64xbf16>
    %cst_39 = arith.constant dense<0.000000e+00> : vector<48x64xf32>
    %66 = tpu.matmul %64, %65, %cst_39 {dimension_numbers = #tpu.dot_dimension_numbers<[1], [0], [0], [1], [0, 0, 1, 1], [], []>} : vector<48x32xbf16>, vector<32x64xbf16>, vector<48x64xf32> -> vector<48x64xf32>
    %67 = vector.extract_strided_slice %66 {offsets = [0, 0], sizes = [24, 64], strides = [1, 1]} : vector<48x64xf32> to vector<24x64xf32>
    %c0_40 = arith.constant 0 : index
    %c0_41 = arith.constant 0 : index
    %68 = vector.load %arg6[%c0_40, %c0_41] : memref<64x512xbf16, #tpu.memory_space<vmem>>, vector<64x512xbf16>
    %69 = arith.truncf %67 : vector<24x64xf32> to vector<24x64xbf16>
    %cst_42 = arith.constant dense<0.000000e+00> : vector<24x512xf32>
    %70 = tpu.matmul %69, %68, %cst_42 {dimension_numbers = #tpu.dot_dimension_numbers<[1], [0], [0], [1], [0, 0, 1, 1], [], []>} : vector<24x64xbf16>, vector<64x512xbf16>, vector<24x512xf32> -> vector<24x512xf32>
    %71 = vector.extract_strided_slice %66 {offsets = [24, 0], sizes = [24, 64], strides = [1, 1]} : vector<48x64xf32> to vector<24x64xf32>
    %c0_43 = arith.constant 0 : index
    %c0_44 = arith.constant 0 : index
    %72 = vector.load %arg7[%c0_43, %c0_44] : memref<64x512xbf16, #tpu.memory_space<vmem>>, vector<64x512xbf16>
    %73 = arith.truncf %71 : vector<24x64xf32> to vector<24x64xbf16>
    %cst_45 = arith.constant dense<0.000000e+00> : vector<24x512xf32>
    %74 = tpu.matmul %73, %72, %cst_45 {dimension_numbers = #tpu.dot_dimension_numbers<[1], [0], [0], [1], [0, 0, 1, 1], [], []>} : vector<24x64xbf16>, vector<64x512xbf16>, vector<24x512xf32> -> vector<24x512xf32>
    %75 = vector.extract_strided_slice %70 {offsets = [0, 0], sizes = [16, 512], strides = [1, 1]} : vector<24x512xf32> to vector<16x512xf32>
    %76 = vector.extract_strided_slice %74 {offsets = [0, 0], sizes = [16, 512], strides = [1, 1]} : vector<24x512xf32> to vector<16x512xf32>
    %77 = arith.mulf %75, %76 : vector<16x512xf32>
    %78 = vector.extract_strided_slice %70 {offsets = [16, 0], sizes = [8, 512], strides = [1, 1]} : vector<24x512xf32> to vector<8x512xf32>
    %79 = vector.extract_strided_slice %74 {offsets = [16, 0], sizes = [8, 512], strides = [1, 1]} : vector<24x512xf32> to vector<8x512xf32>
    %80 = tpu.concatenate %77, %78, %79 in 0 : vector<16x512xf32>, vector<8x512xf32>, vector<8x512xf32> -> vector<32x512xf32>
    %c0_46 = arith.constant 0 : index
    %c0_47 = arith.constant 0 : index
    %81 = vector.load %arg8[%c0_46, %c0_47] : memref<16x32xbf16, #tpu.memory_space<vmem>>, vector<16x32xbf16>
    %82 = arith.truncf %80 : vector<32x512xf32> to vector<32x512xbf16>
    %cst_48 = arith.constant dense<0.000000e+00> : vector<16x512xf32>
    %83 = tpu.matmul %81, %82, %cst_48 {dimension_numbers = #tpu.dot_dimension_numbers<[1], [0], [0], [1], [0, 0, 1, 1], [], []>} : vector<16x32xbf16>, vector<32x512xbf16>, vector<16x512xf32> -> vector<16x512xf32>
    %c0_49 = arith.constant 0 : index
    %c0_50 = arith.constant 0 : index
    %84 = vector.load %arg9[%c0_49, %c0_50] : memref<16x1xf32, #tpu.memory_space<vmem>>, vector<16x1xf32>
    %85 = vector.broadcast %84 : vector<16x1xf32> to vector<16x512xf32>
    %86 = arith.addf %83, %85 : vector<16x512xf32>
    %cst_51 = arith.constant 0.000000e+00 : f32
    %87 = vector.broadcast %cst_51 : f32 to vector<16x512xf32>
    %88 = arith.maximumf %86, %87 : vector<16x512xf32>
    %c0_52 = arith.constant 0 : index
    %c0_53 = arith.constant 0 : index
    %89 = vector.load %arg10[%c0_52, %c0_53] : memref<16x1xf32, #tpu.memory_space<vmem>>, vector<16x1xf32>
    %90 = vector.broadcast %89 : vector<16x1xf32> to vector<16x512xf32>
    %91 = arith.mulf %88, %90 : vector<16x512xf32>
    %cst_54 = arith.constant dense<0.000000e+00> : vector<512xf32>
    %92 = vector.multi_reduction <add>, %91, %cst_54 [0] : vector<16x512xf32> to vector<512xf32>
    %93 = vector.shape_cast %92 : vector<512xf32> to vector<1x512xf32>
    %94 = vector.shape_cast %93 : vector<1x512xf32> to vector<1x1x512xf32>
    %cst_55 = arith.constant dense<0xFF800000> : vector<1xf32>
    %95 = vector.multi_reduction <maximumf>, %94, %cst_55 [1, 2] : vector<1x1x512xf32> to vector<1xf32>
    %96 = vector.shape_cast %95 : vector<1xf32> to vector<1x1x1xf32>
    %97 = vector.extract %96[0, 0, 0] : f32 from vector<1x1x1xf32>
    %98 = vector.broadcast %97 : f32 to vector<1x512xf32>
    %99 = arith.subf %93, %98 : vector<1x512xf32>
    %100 = math.exp %99 : vector<1x512xf32>
    %101 = vector.extract_strided_slice %100 {offsets = [0, 0], sizes = [1, 64], strides = [1, 1]} : vector<1x512xf32> to vector<1x64xf32>
    %cst_56 = arith.constant 0.000000e+00 : f32
    %102 = vector.broadcast %cst_56 : f32 to vector<1x64xf32>
    %103 = vector.extract_strided_slice %100 {offsets = [0, 64], sizes = [1, 64], strides = [1, 1]} : vector<1x512xf32> to vector<1x64xf32>
    %104 = arith.addf %101, %103 : vector<1x64xf32>
    %cst_57 = arith.constant 1.000000e+00 : f32
    %105 = vector.broadcast %cst_57 : f32 to vector<1x64xf32>
    %106 = arith.mulf %105, %103 : vector<1x64xf32>
    %107 = arith.addf %102, %106 : vector<1x64xf32>
    %108 = vector.extract_strided_slice %100 {offsets = [0, 128], sizes = [1, 64], strides = [1, 1]} : vector<1x512xf32> to vector<1x64xf32>
    %109 = arith.addf %104, %108 : vector<1x64xf32>
    %cst_58 = arith.constant 2.000000e+00 : f32
    %110 = vector.broadcast %cst_58 : f32 to vector<1x64xf32>
    %111 = arith.mulf %110, %108 : vector<1x64xf32>
    %112 = arith.addf %107, %111 : vector<1x64xf32>
    %113 = vector.extract_strided_slice %100 {offsets = [0, 192], sizes = [1, 64], strides = [1, 1]} : vector<1x512xf32> to vector<1x64xf32>
    %114 = arith.addf %109, %113 : vector<1x64xf32>
    %cst_59 = arith.constant 3.000000e+00 : f32
    %115 = vector.broadcast %cst_59 : f32 to vector<1x64xf32>
    %116 = arith.mulf %115, %113 : vector<1x64xf32>
    %117 = arith.addf %112, %116 : vector<1x64xf32>
    %118 = vector.extract_strided_slice %100 {offsets = [0, 256], sizes = [1, 64], strides = [1, 1]} : vector<1x512xf32> to vector<1x64xf32>
    %119 = arith.addf %114, %118 : vector<1x64xf32>
    %cst_60 = arith.constant 4.000000e+00 : f32
    %120 = vector.broadcast %cst_60 : f32 to vector<1x64xf32>
    %121 = arith.mulf %120, %118 : vector<1x64xf32>
    %122 = arith.addf %117, %121 : vector<1x64xf32>
    %123 = vector.extract_strided_slice %100 {offsets = [0, 320], sizes = [1, 64], strides = [1, 1]} : vector<1x512xf32> to vector<1x64xf32>
    %124 = arith.addf %119, %123 : vector<1x64xf32>
    %cst_61 = arith.constant 5.000000e+00 : f32
    %125 = vector.broadcast %cst_61 : f32 to vector<1x64xf32>
    %126 = arith.mulf %125, %123 : vector<1x64xf32>
    %127 = arith.addf %122, %126 : vector<1x64xf32>
    %128 = vector.extract_strided_slice %100 {offsets = [0, 384], sizes = [1, 64], strides = [1, 1]} : vector<1x512xf32> to vector<1x64xf32>
    %129 = arith.addf %124, %128 : vector<1x64xf32>
    %cst_62 = arith.constant 6.000000e+00 : f32
    %130 = vector.broadcast %cst_62 : f32 to vector<1x64xf32>
    %131 = arith.mulf %130, %128 : vector<1x64xf32>
    %132 = arith.addf %127, %131 : vector<1x64xf32>
    %133 = vector.extract_strided_slice %100 {offsets = [0, 448], sizes = [1, 64], strides = [1, 1]} : vector<1x512xf32> to vector<1x64xf32>
    %134 = arith.addf %129, %133 : vector<1x64xf32>
    %cst_63 = arith.constant 7.000000e+00 : f32
    %135 = vector.broadcast %cst_63 : f32 to vector<1x64xf32>
    %136 = arith.mulf %135, %133 : vector<1x64xf32>
    %137 = arith.addf %132, %136 : vector<1x64xf32>
    %138 = arith.divf %137, %134 : vector<1x64xf32>
    %c0_64 = arith.constant 0 : index
    %c0_65 = arith.constant 0 : index
    %c0_66 = arith.constant 0 : index
    %139 = vector.load %arg11[%c0_64, %c0_65, %c0_66] : memref<1x1x64xf32, #tpu.memory_space<vmem>>, vector<1x1x64xf32>
    %140 = vector.shape_cast %139 : vector<1x1x64xf32> to vector<1x64xf32>
    %141 = vector.shape_cast %138 : vector<1x64xf32> to vector<1x1x64xf32>
    tpu.vector_store %arg11[%c0_64, %c0_65, %c0_66], %141 {strides = array<i32>} : memref<1x1x64xf32, #tpu.memory_space<vmem>>, vector<1x1x64xf32>,
    return
  }
  func.func @transform_0(%arg0: i32) -> (i32, i32, i32) {
    %c0_i32 = arith.constant 0 : i32
    %c0_i32_0 = arith.constant 0 : i32
    %c0_i32_1 = arith.constant 0 : i32
    return %arg0, %c0_i32, %c0_i32_0 : i32, i32, i32
  }
  func.func @transform_1(%arg0: i32) -> (i32, i32) {
    %c0_i32 = arith.constant 0 : i32
    %c0_i32_0 = arith.constant 0 : i32
    %c0_i32_1 = arith.constant 0 : i32
    return %c0_i32, %c0_i32_0 : i32, i32
  }
  func.func @transform_2(%arg0: i32) -> (i32, i32) {
    %c0_i32 = arith.constant 0 : i32
    %c0_i32_0 = arith.constant 0 : i32
    %c0_i32_1 = arith.constant 0 : i32
    return %c0_i32, %c0_i32_0 : i32, i32
  }
  func.func @transform_3(%arg0: i32) -> (i32, i32, i32) {
    %c0_i32 = arith.constant 0 : i32
    %c0_i32_0 = arith.constant 0 : i32
    %c0_i32_1 = arith.constant 0 : i32
    %c0_i32_2 = arith.constant 0 : i32
    return %c0_i32, %c0_i32_0, %c0_i32_1 : i32, i32, i32
  }
  func.func @transform_4(%arg0: i32) -> (i32, i32) {
    %c0_i32 = arith.constant 0 : i32
    %c0_i32_0 = arith.constant 0 : i32
    %c0_i32_1 = arith.constant 0 : i32
    return %c0_i32, %c0_i32_0 : i32, i32
  }
  func.func @transform_5(%arg0: i32) -> (i32, i32) {
    %c0_i32 = arith.constant 0 : i32
    %c0_i32_0 = arith.constant 0 : i32
    %c0_i32_1 = arith.constant 0 : i32
    return %c0_i32, %c0_i32_0 : i32, i32
  }
  func.func @transform_6(%arg0: i32) -> (i32, i32) {
    %c0_i32 = arith.constant 0 : i32
    %c0_i32_0 = arith.constant 0 : i32
    %c0_i32_1 = arith.constant 0 : i32
    return %c0_i32, %c0_i32_0 : i32, i32
  }
  func.func @transform_7(%arg0: i32) -> (i32, i32) {
    %c0_i32 = arith.constant 0 : i32
    %c0_i32_0 = arith.constant 0 : i32
    %c0_i32_1 = arith.constant 0 : i32
    return %c0_i32, %c0_i32_0 : i32, i32
  }
  func.func @transform_8(%arg0: i32) -> (i32, i32) {
    %c0_i32 = arith.constant 0 : i32
    %c0_i32_0 = arith.constant 0 : i32
    %c0_i32_1 = arith.constant 0 : i32
    return %c0_i32, %c0_i32_0 : i32, i32
  }
  func.func @transform_9(%arg0: i32) -> (i32, i32) {
    %c0_i32 = arith.constant 0 : i32
    %c0_i32_0 = arith.constant 0 : i32
    %c0_i32_1 = arith.constant 0 : i32
    return %c0_i32, %c0_i32_0 : i32, i32
  }
  func.func @transform_10(%arg0: i32) -> (i32, i32, i32) {
    %c0_i32 = arith.constant 0 : i32
    %c0_i32_0 = arith.constant 0 : i32
    %c0_i32_1 = arith.constant 0 : i32
    return %arg0, %c0_i32, %c0_i32_0 : i32, i32, i32
  }
}

</mosaic_0001>

<bundles_post_ra>
// kernel: simple_stereo_forward.1
= control target key start
LH: loop header
LB: loop body
LE: loop exit
PB: predicated region body
PF: predicated region fallthrough
CT: control target
= control target key end

     0   :  { %s3366_s13 = smov 0   ;;  %s3902_s0 = inlined_call_operand.vmem [shape: bf16[2,64,256], index: 0, kind: input, shape index: {}]   ;;  %s3903_s1 = inlined_call_operand.vmem [shape: bf16[32,64], index: 1, kind: input, shape index: {}]   ;;  %s3904_s2 = inlined_call_operand.vmem [shape: bf16[256,576], index: 2, kind: input, shape index: {}]   ;;  %s3905_s3 = inlined_call_operand.vmem [shape: bf16[9,32,32], index: 3, kind: input, shape index: {}]   ;;  %s3906_s4 = inlined_call_operand.vmem [shape: bf16[48,32], index: 4, kind: input, shape index: {}]   ;;  %s3907_s5 = inlined_call_operand.vmem [shape: bf16[64,512], index: 5, kind: input, shape index: {}]   ;;  %s3908_s6 = inlined_call_operand.vmem [shape: bf16[64,512], index: 6, kind: input, shape index: {}]   ;;  %s3909_s7 = inlined_call_operand.vmem [shape: bf16[16,32], index: 7, kind: input, shape index: {}]   ;;  %s3910_s8 = inlined_call_operand.vmem [shape: f32[16,1], index: 8, kind: input, shape index: {}]   ;;  %s3911_s9 = inlined_call_operand.vmem [shape: f32[16,1], index: 9, kind: input, shape index: {}]   ;;  %s3912_s10 = inlined_call_operand.vmem [shape: f32[2,1,64], index: 10, kind: output, shape index: {}]  }
   0x1 LB: > { %s2669_s14 = sadd.s32 4294967295, %s3305_s13   ;;  %p2673_p0 = scmp.ge.s32.totalorder %s3305_s13, 1  ;;  %s3305_s13 = sphi %s3366_s13, %s20_s13  }
   0x2   : > { %p312_p1 = scmp.lt.s32.totalorder %s3305_s13, 3 }
   0x4   : > { %p313_p2 = pnand %p2673_p0, %p312_p1 }
   0x5   : > { %p348_p3 = scmp.lt.s32.totalorder (!%p313_p2), %s2669_s14, 1  ;;  %v3307_v0 = vmov (!%p313_p2), 0   ;;  %v3107_v1 = vld [vmem:[%s3904_s2 + $0x4] ss:$20 sps:$4 sm:$0xff] (!%p313_p2)   ;;  %v3109_v2 = vld [vmem:[%s3904_s2] ss:$20 sps:$4 sm:$0xff] (!%p313_p2)  }
   0x6   : > { %316 = sbr.rel (%p313_p2) target bundleno = 2214 (0x8a6), region = 60  ;;  %458 = vmatprep.mubr.bf16.mxu0 (!%p313_p2), %v3307_v0  ;;  %3092 = vset.pattern.permute.xlu1 (!%p313_p2), %v3307_v0  ;;  %v3113_v3 = vld [vmem:[%s3904_s2 + $0x2c] ss:$20 sps:$4 sm:$0xff] (!%p313_p2)   ;;  %v3115_v9 = vld [vmem:[%s3904_s2 + $0x28] ss:$20 sps:$4 sm:$0xff] (!%p313_p2)   ;;  %vm419_vm0 = vcmask (!%p313_p2), 523264  }
   0x7   : > { %3091 = vset.pattern.permute.xlu0 (!%p313_p2), %v3307_v0  ;;  %1003 = vmatprep.subr.bf16.mxu1 (!%p313_p2), %v3107_v1  ;;  %v3119_v12 = vld [vmem:[%s3904_s2 + $0x54] ss:$20 sps:$4 sm:$0xff] (!%p313_p2)   ;;  %v3121_v13 = vld [vmem:[%s3904_s2 + $0x50] ss:$20 sps:$4 sm:$0xff] (!%p313_p2)   ;;  %v3127_v16 = vld [vmem:[%s3904_s2 + $0x78] ss:$20 sps:$4 sm:$0xff] (!%p313_p2)  }
   0x8   : > { %1004 = vmatpush1.bf16.msra.mxu1 (!%p313_p2), %v3109_v2  ;;  %v3125_v15 = vld [vmem:[%s3904_s2 + $0x7c] ss:$20 sps:$4 sm:$0xff] (!%p313_p2)   ;;  %v3112_v17 = vld [vmem:[%s3904_s2 + $0xc] ss:$20 sps:$4 sm:$0xff] (!%p313_p2)   ;;  %v3131_v18 = vld [vmem:[%s3904_s2 + $0xa4] ss:$20 sps:$4 sm:$0xff] (!%p313_p2)  }
   0x9   : > { %1005 = vmatprep.subr.bf16.mxu1 (!%p313_p2), %v3113_v3  ;;  %v3105_v19 = vld [vmem:[%s3903_s1] sm:$0xff] (!%p313_p2)   ;;  %v3110_v20 = vld [vmem:[%s3904_s2 + $0x8] ss:$20 sps:$4 sm:$0xff] (!%p313_p2)   ;;  %v3122_v29 = vld [vmem:[%s3904_s2 + $0x58] ss:$20 sps:$4 sm:$0xff] (!%p313_p2)   ;;  %vm1187_vm1 = vcmask (!%p313_p2), 261120  }
   0xa   : > { %v3118_v21 = vld [vmem:[%s3904_s2 + $0x34] ss:$20 sps:$4 sm:$0xff] (!%p313_p2)   ;;  %v3137_v23 = vld [vmem:[%s3904_s2 + $0xcc] ss:$20 sps:$4 sm:$0xff] (!%p313_p2)   ;;  %v3116_v24 = vld [vmem:[%s3904_s2 + $0x30] ss:$20 sps:$4 sm:$0xff] (!%p313_p2)  }
   0xb   : > { %v3133_v22 = vld [vmem:[%s3904_s2 + $0xa0] ss:$20 sps:$4 sm:$0xff] (!%p313_p2)   ;;  %v3124_v25 = vld [vmem:[%s3904_s2 + $0x5c] ss:$20 sps:$4 sm:$0xff] (!%p313_p2)   ;;  %v3106_v28 = vld [vmem:[%s3903_s1 + $0x8] sm:$0xff] (!%p313_p2)   ;;  %s3308_s23 = smov (!%p313_p2), 64  }
   0xc   : > { %1006 = vmatpush1.bf16.msra.mxu1 (!%p313_p2), %v3115_v9  ;;  %v3139_v26 = vld [vmem:[%s3904_s2 + $0xc8] ss:$20 sps:$4 sm:$0xff] (!%p313_p2)   ;;  %v3130_v30 = vld [vmem:[%s3904_s2 + $0x84] ss:$20 sps:$4 sm:$0xff] (!%p313_p2)   ;;  %v3128_v33 = vld [vmem:[%s3904_s2 + $0x80] ss:$20 sps:$4 sm:$0xff] (!%p313_p2)  }
   0xd   : > { %s3914_s14 = smov (!%p348_p3, %s2669_s14), 1  ;;  %1007 = vmatprep.subr.bf16.mxu1 %v3119_v12  ;;  %v3143_v27 = vld [vmem:[%s3904_s2 + $0xf4] ss:$20 sps:$4 sm:$0xff]   ;;  %v3145_v31 = vld [vmem:[%s3904_s2 + $0xf0] ss:$20 sps:$4 sm:$0xff]   ;;  %vm3310_vm2 = vmmov 0  }
   0xe   : > { %s2887_s19 = sshll.u32 %s3914_s14, 6  ;;  %v3149_v32 = vld [vmem:[%s3904_s2 + $0x11c] ss:$20 sps:$4 sm:$0xff]   ;;  %v3136_v34 = vld [vmem:[%s3904_s2 + $0xac] ss:$20 sps:$4 sm:$0xff]   ;;  %s355_s21 = scalar_lea.vmem %s3912_s10, %s3914_s14  ;;  %vm2620_vm3 = vcmask 516096  }
   0xf   : > { %s352_s22 = scalar_lea.vmem %s3902_s0, %s2887_s19  ;;  %v3151_v35 = vld [vmem:[%s3904_s2 + $0x118] ss:$20 sps:$4 sm:$0xff]   ;;  %v3134_v37 = vld [vmem:[%s3904_s2 + $0xa8] ss:$20 sps:$4 sm:$0xff]   ;;  %v3157_v39 = vld [vmem:[%s3904_s2 + $0x140] ss:$20 sps:$4 sm:$0xff]  }
  0x10   : > { %v3093_v4 = vld [vmem:[%s352_s22 + $0x4] ss:$8 sps:$4 sm:$0xff]   ;;  %v3095_v5 = vld [vmem:[%s352_s22] ss:$8 sps:$4 sm:$0xff]   ;;  %v3096_v6 = vld [vmem:[%s352_s22 + $0x14] ss:$8 sps:$4 sm:$0xff]   ;;  %1008 = vmatpush1.bf16.msra.mxu1 %v3121_v13 }
  0x11   : > { %426 = vmatprep.subr.bf16.mxu0 %v3093_v4  ;;  %v3098_v7 = vld [vmem:[%s352_s22 + $0x10] ss:$8 sps:$4 sm:$0xff]   ;;  %v3099_v8 = vld [vmem:[%s352_s22 + $0x24] ss:$8 sps:$4 sm:$0xff]   ;;  %v3101_v10 = vld [vmem:[%s352_s22 + $0x20] ss:$8 sps:$4 sm:$0xff]   ;;  %1009 = vmatprep.subr.bf16.mxu1 %v3125_v15 }
  0x12   : > { %427 = vmatpush1.bf16.msra.mxu0 %v3095_v5  ;;  %v3102_v11 = vld [vmem:[%s352_s22 + $0x34] ss:$8 sps:$4 sm:$0xff]   ;;  %v3104_v14 = vld [vmem:[%s352_s22 + $0x30] ss:$8 sps:$4 sm:$0xff]   ;;  %v3161_v40 = vld [vmem:[%s3904_s2 + $0x16c] ss:$20 sps:$4 sm:$0xff]  }
  0x13   : > { %428 = vmatprep.subr.bf16.mxu0 %v3096_v6  ;;  %v3155_v36 = vld [vmem:[%s3904_s2 + $0x144] ss:$20 sps:$4 sm:$0xff]   ;;  %v3142_v38 = vld [vmem:[%s3904_s2 + $0xd4] ss:$20 sps:$4 sm:$0xff]   ;;  %v3148_v42 = vld [vmem:[%s3904_s2 + $0xfc] ss:$20 sps:$4 sm:$0xff]  }
  0x14   : > { %1010 = vmatpush1.bf16.msra.mxu1 %v3127_v16  ;;  %v3140_v41 = vld [vmem:[%s3904_s2 + $0xd0] ss:$20 sps:$4 sm:$0xff]   ;;  %v3163_v43 = vld [vmem:[%s3904_s2 + $0x168] ss:$20 sps:$4 sm:$0xff]   ;;  %v3146_v44 = vld [vmem:[%s3904_s2 + $0xf8] ss:$20 sps:$4 sm:$0xff]  }
  0x15   : > { %1011 = vmatprep.subr.bf16.mxu1 %v3131_v18  ;;  %v3167_v45 = vld [vmem:[%s3904_s2 + $0x194] ss:$20 sps:$4 sm:$0xff]   ;;  %v3154_v46 = vld [vmem:[%s3904_s2 + $0x124] ss:$20 sps:$4 sm:$0xff]   ;;  %v3173_v48 = vld [vmem:[%s3904_s2 + $0x1bc] ss:$20 sps:$4 sm:$0xff]  }
  0x16   : > { %429 = vmatpush1.bf16.msra.mxu0 %v3098_v7  ;;  %v3169_v47 = vld [vmem:[%s3904_s2 + $0x190] ss:$20 sps:$4 sm:$0xff]   ;;  %v3152_v49 = vld [vmem:[%s3904_s2 + $0x120] ss:$20 sps:$4 sm:$0xff]   ;;  %v3175_v51 = vld [vmem:[%s3904_s2 + $0x1b8] ss:$20 sps:$4 sm:$0xff]  }
  0x17   : > { %430 = vmatprep.subr.bf16.mxu0 %v3099_v8  ;;  %v3160_v50 = vld [vmem:[%s3904_s2 + $0x14c] ss:$20 sps:$4 sm:$0xff]   ;;  %v3179_v52 = vld [vmem:[%s3904_s2 + $0x1e4] ss:$20 sps:$4 sm:$0xff]   ;;  %v3158_v53 = vld [vmem:[%s3904_s2 + $0x148] ss:$20 sps:$4 sm:$0xff]  }
  0x18   : > { %1012 = vmatpush1.bf16.msra.mxu1 %v3133_v22  ;;  %v3166_v54 = vld [vmem:[%s3904_s2 + $0x174] ss:$20 sps:$4 sm:$0xff]   ;;  %v3185_v56 = vld [vmem:[%s3904_s2 + $0x20c] ss:$20 sps:$4 sm:$0xff]   ;;  %v3164_v57 = vld [vmem:[%s3904_s2 + $0x170] ss:$20 sps:$4 sm:$0xff]  }
  0x19   : > { %1013 = vmatprep.subr.bf16.mxu1 %v3137_v23  ;;  %v3181_v55 = vld [vmem:[%s3904_s2 + $0x1e0] ss:$20 sps:$4 sm:$0xff]   ;;  %v3172_v58 = vld [vmem:[%s3904_s2 + $0x19c] ss:$20 sps:$4 sm:$0xff]   ;;  %v3170_v60 = vld [vmem:[%s3904_s2 + $0x198] ss:$20 sps:$4 sm:$0xff]  }
  0x1a   : > { %431 = vmatpush1.bf16.msra.mxu0 %v3101_v10  ;;  %v3187_v59 = vld [vmem:[%s3904_s2 + $0x208] ss:$20 sps:$4 sm:$0xff]   ;;  %v3178_v61 = vld [vmem:[%s3904_s2 + $0x1c4] ss:$20 sps:$4 sm:$0xff]   ;;  %v3176_v62 = vld [vmem:[%s3904_s2 + $0x1c0] ss:$20 sps:$4 sm:$0xff]  }
  0x1b   : > { %432 = vmatprep.subr.bf16.mxu0 %v3102_v11  ;;  %v3184_v63 = vld [vmem:[%s3904_s2 + $0x1ec] ss:$20 sps:$4 sm:$0xff]   ;;  %v3182_v1 = vld [vmem:[%s3904_s2 + $0x1e8] ss:$20 sps:$4 sm:$0xff]   ;;  %v3188_v3 = vld [vmem:[%s3904_s2 + $0x210] ss:$20 sps:$4 sm:$0xff]  }
  0x1c   : > { %1014 = vmatpush1.bf16.msra.mxu1 %v3139_v26  ;;  %v3190_v2 = vld [vmem:[%s3904_s2 + $0x214] ss:$20 sps:$4 sm:$0xff]   ;;  %v3193_v5 = vld [vmem:[%s3904_s2 + $0x230] ss:$20 sps:$4 sm:$0xff]   ;;  %v3194_v7 = vld [vmem:[%s3904_s2 + $0x238] ss:$20 sps:$4 sm:$0xff]  }
  0x1d   : > { %1015 = vmatprep.subr.bf16.mxu1 %v3143_v27  ;;  %v3191_v4 = vld [vmem:[%s3904_s2 + $0x234] ss:$20 sps:$4 sm:$0xff]   ;;  %v3196_v6 = vld [vmem:[%s3904_s2 + $0x23c] ss:$20 sps:$4 sm:$0xff]   ;;  %v3199_v9 = vld [vmem:[%s3904_s2 + $0x258] ss:$20 sps:$4 sm:$0xff]  }
  0x1e   : > { %433 = vmatpush1.bf16.msra.mxu0 %v3104_v14  ;;  %v3197_v8 = vld [vmem:[%s3904_s2 + $0x25c] ss:$20 sps:$4 sm:$0xff]   ;;  %v3202_v10 = vld [vmem:[%s3904_s2 + $0x264] ss:$20 sps:$4 sm:$0xff]   ;;  %v3200_v11 = vld [vmem:[%s3904_s2 + $0x260] ss:$20 sps:$4 sm:$0xff]  }
  0x1f   : > { %1056 = vmatprep.subr.bf16.mxu0 %v3112_v17  ;;  %v3203_v12 = vld [vmem:[%s3904_s2 + $0x150] ss:$20 sps:$4 sm:$0xff]  }
  0x20   : > { %1016 = vmatpush1.bf16.msra.mxu1 %v3145_v31  ;;  %v3204_v23 = vld [vmem:[%s3904_s2 + $0x10] ss:$20 sps:$4 sm:$0xff]  }
  0x21   : > { %2686 = vmatmul.mubr.msk.bf16.vlgmr.msra.gmra.mrb[0].mxu0 %vm419_vm0, %v3105_v19  ;;  %1017 = vmatprep.subr.bf16.mxu1 %v3149_v32  ;;  %v3207_v32 = vld [vmem:[%s3904_s2 + $0x1a0] ss:$20 sps:$4 sm:$0xff]  }
  0x22   : > { %468 = vmatprep.mubr.bf16.mxu0 %v3307_v0  ;;  %1057 = vmatpush1.bf16.msra.mxu0 %v3110_v20 }
  0x23   : > { %1058 = vmatprep.subr.bf16.mxu0 %v3118_v21 }
  0x24   : > { %1018 = vmatpush1.bf16.msra.mxu1 %v3151_v35 }
  0x25   : > { %1019 = vmatprep.subr.bf16.mxu1 %v3155_v36 }
  0x26   : > { %1059 = vmatpush1.bf16.msra.mxu0 %v3116_v24  ;;  %v3205_v24 = vld [vmem:[%s3904_s2 + $0x178] ss:$20 sps:$4 sm:$0xff]  }
  0x27   : > { %1060 = vmatprep.subr.bf16.mxu0 %v3124_v25 }
  0x28   : > { %1020 = vmatpush1.bf16.msra.mxu1 %v3157_v39  ;;  %v3210_v39 = vld [vmem:[%s3904_s2 + $0x88] ss:$20 sps:$4 sm:$0xff]  }
  0x29   : > { %2687 = vmatmul.mubr.msk.bf16.gmra.mrb[4].mxu0 %vm419_vm0, %v3106_v28  ;;  %1021 = vmatprep.subr.bf16.mxu1 %v3161_v40  ;;  %v3206_v28 = vld [vmem:[%s3904_s2 + $0x38] ss:$20 sps:$4 sm:$0xff]   ;;  %v3211_v40 = vld [vmem:[%s3904_s2 + $0x1f0] ss:$20 sps:$4 sm:$0xff]  }
  0x2a   : > { %1061 = vmatpush1.bf16.msra.mxu0 %v3122_v29 }
  0x2b   : > { %1062 = vmatprep.subr.bf16.mxu0 %v3130_v30 }
  0x2c   : > { %1022 = vmatpush1.bf16.msra.mxu1 %v3163_v43  ;;  %v3214_v43 = vld [vmem:[%s3904_s2 + $0xd8] ss:$20 sps:$4 sm:$0xff]  }
  0x2d   : > { %1023 = vmatprep.subr.bf16.mxu1 %v3167_v45  ;;  %v3216_v45 = vld [vmem:[%s3904_s2 + $0x100] ss:$20 sps:$4 sm:$0xff]  }
  0x2e   : > { %1063 = vmatpush1.bf16.msra.mxu0 %v3128_v33 }
  0x2f   : > { %1064 = vmatprep.subr.bf16.mxu0 %v3136_v34 }
  0x30   : > { %1024 = vmatpush1.bf16.msra.mxu1 %v3169_v47  ;;  %v3218_v47 = vld [vmem:[%s3904_s2 + $0x128] ss:$20 sps:$4 sm:$0xff]  }
  0x31   : > { %1025 = vmatprep.subr.bf16.mxu1 %v3173_v48 }
  0x32   : > { %1065 = vmatpush1.bf16.msra.mxu0 %v3134_v37  ;;  %v3208_v37 = vld [vmem:[%s3904_s2 + $0x60] ss:$20 sps:$4 sm:$0xff]  }
  0x33   : > { %1066 = vmatprep.subr.bf16.mxu0 %v3142_v38  ;;  %v3209_v38 = vld [vmem:[%s3904_s2 + $0x1c8] ss:$20 sps:$4 sm:$0xff]  }
  0x34   : > { %1026 = vmatpush1.bf16.msra.mxu1 %v3175_v51 }
  0x35   : > { %1027 = vmatprep.subr.bf16.mxu1 %v3179_v52 }
  0x36   : > { %1067 = vmatpush1.bf16.msra.mxu0 %v3140_v41  ;;  %v3212_v41 = vld [vmem:[%s3904_s2 + $0xb0] ss:$20 sps:$4 sm:$0xff]  }
  0x37   : > { %1068 = vmatprep.subr.bf16.mxu0 %v3148_v42  ;;  %v3213_v42 = vld [vmem:[%s3904_s2 + $0x218] ss:$20 sps:$4 sm:$0xff]  }
  0x38   : > { %1028 = vmatpush1.bf16.msra.mxu1 %v3181_v55 }
  0x39   : > { %1029 = vmatprep.subr.bf16.mxu1 %v3185_v56 }
  0x3a   : > { %1069 = vmatpush1.bf16.msra.mxu0 %v3146_v44  ;;  %v3215_v44 = vld [vmem:[%s3904_s2 + $0x240] ss:$20 sps:$4 sm:$0xff]  }
  0x3b   : > { %1070 = vmatprep.subr.bf16.mxu0 %v3154_v46  ;;  %v3217_v46 = vld [vmem:[%s3904_s2 + $0x268] ss:$20 sps:$4 sm:$0xff]  }
  0x3c   : > { %1030 = vmatpush1.bf16.msra.mxu1 %v3187_v59 }
  0x3d   : > { %1031 = vmatprep.subr.bf16.mxu1 %v3191_v4 }
  0x3e   : > { %1071 = vmatpush1.bf16.msra.mxu0 %v3152_v49 }
  0x3f   : > { %1072 = vmatprep.subr.bf16.mxu0 %v3160_v50 }
  0x40   : > { %1032 = vmatpush1.bf16.msra.mxu1 %v3193_v5 }
  0x41   : > { %1033 = vmatprep.subr.bf16.mxu1 %v3197_v8 }
  0x42   : > { %1073 = vmatpush1.bf16.msra.mxu0 %v3158_v53 }
  0x43   : > { %1074 = vmatprep.subr.bf16.mxu0 %v3166_v54  ;;  %v3219_v54 = vld [vmem:[%s3905_s3 + $0x10] sm:$0xff]  }
  0x44   : > { %1034 = vmatpush1.bf16.msra.mxu1 %v3199_v9 }
  0x45   : > { %2888 = vmatprep.subr.bf16.mxu1 %v3203_v12 }
  0x46   : > { %1075 = vmatpush1.bf16.msra.mxu0 %v3164_v57 }
  0x47   : > { %1076 = vmatprep.subr.bf16.mxu0 %v3172_v58 }
  0x4a   : > { %1077 = vmatpush1.bf16.msra.mxu0 %v3170_v60 }
  0x4b   : > { %1078 = vmatprep.subr.bf16.mxu0 %v3178_v61 }
  0x4e   : > { %1079 = vmatpush1.bf16.msra.mxu0 %v3176_v62 }
  0x4f   : > { %1080 = vmatprep.subr.bf16.mxu0 %v3184_v63 }
  0x52   : > { %1081 = vmatpush1.bf16.msra.mxu0 %v3182_v1 }
  0x53   : > { %1082 = vmatprep.subr.bf16.mxu0 %v3190_v2 }
  0x56   : > { %1083 = vmatpush1.bf16.msra.mxu0 %v3188_v3 }
  0x57   : > { %1084 = vmatprep.subr.bf16.mxu0 %v3196_v6 }
  0x5a   : > { %1085 = vmatpush1.bf16.msra.mxu0 %v3194_v7 }
  0x5b   : > { %1086 = vmatprep.subr.bf16.mxu0 %v3202_v10 }
  0x5e   : > { %1087 = vmatpush1.bf16.msra.mxu0 %v3200_v11 }
  0xf4   : > { %v460_v13 = vpop.f32.mrb[0].mxu0 }
  0xf5   : > { %v462_v14 = vpop.f32.mrb[1].mxu0  ;;  %v479_v16 = vmax.f32 %v460_v13, 0.0 }
  0xf6   : > { %v464_v15 = vpop.f32.mrb[2].mxu0  ;;  %v480_v19 = vmax.f32 %v462_v14, 0.0 }
  0xf7   : > { %v481_v17 = vmax.f32 %v464_v15, 0.0  ;;  %v466_v18 = vpop.f32.mrb[3].mxu0 }
  0xf8   : > { %v482_v20 = vmax.f32 %v466_v18, 0.0 }
  0xf9   : > { %v583_v21 = vpack.c.bf16 %v481_v17, %v479_v16 }
  0xfa   : > { %v584_v22 = vpack.c.bf16 %v482_v20, %v480_v19 }
  0xfc   : > { %v470_v25 = vpop.f32.mrb[4].mxu0  ;;  %1035 = vmatprep.mubr.bf16.mxu1 %v584_v22  ;;  %1088 = vmatprep.mubr.bf16.mxu0 %v584_v22 }
  0xfd   : > { %v472_v26 = vpop.f32.mrb[5].mxu0  ;;  %1036 = vmatmul.mubr.bf16.vlgmr.msra.gmra.mrb[0].mxu1 %v583_v21  ;;  %1089 = vmatmul.mubr.bf16.vlgmr.msra.gmra.mrb[8].mxu0 %v583_v21  ;;  %v483_v29 = vmax.f32 %v470_v25, 0.0 }
  0xfe   : > { %2889 = vmatpush3.bf16.msra.mxu1 %v3204_v23  ;;  %v474_v27 = vpop.f32.mrb[6].mxu0  ;;  %v484_v33 = vmax.f32 %v472_v26, 0.0  ;;  %v3220_v26 = vld [vmem:[%s3905_s3 + $0x18] sm:$0xff]  }
  0xff   : > { %v485_v30 = vmax.f32 %v474_v27, 0.0  ;;  %v476_v31 = vpop.f32.mrb[7].mxu0  ;;  %2890 = vmatprep.subr.bf16.mxu1 %v3205_v24  ;;  %v3221_v27 = vld [vmem:[%s3905_s3] sm:$0xff]  }
 0x100   : > { %v486_v34 = vmax.f32 %v476_v31, 0.0  ;;  %v3224_v31 = vld [vmem:[%s3905_s3 + $0x28] sm:$0xff]  }
 0x101   : > { %v585_v35 = vpack.c.bf16 %v485_v30, %v483_v29  ;;  %v3223_v29 = vld [vmem:[%s3905_s3 + $0x20] sm:$0xff]  }
 0x102   : > { %v586_v36 = vpack.c.bf16 %v486_v34, %v484_v33  ;;  %2891 = vmatpush3.bf16.msra.mxu1 %v3206_v28  ;;  %v3222_v28 = vld [vmem:[%s3905_s3 + $0x8] sm:$0xff]   ;;  %v3226_v34 = vld [vmem:[%s3905_s3 + $0x38] sm:$0xff]  }
 0x103   : > { %2892 = vmatprep.subr.bf16.mxu1 %v3207_v32  ;;  %v3225_v32 = vld [vmem:[%s3905_s3 + $0x30] sm:$0xff]  }
 0x104   : > { %1045 = vmatprep.mubr.bf16.mxu1 %v586_v36  ;;  %1098 = vmatprep.mubr.bf16.mxu0 %v586_v36 }
 0x105   : > { %1046 = vmatmul.mubr.bf16.gmra.mrb[4].mxu1 %v585_v35  ;;  %1099 = vmatmul.mubr.bf16.gmra.mrb[12].mxu0 %v585_v35 }
 0x106   : > { %2893 = vmatpush3.bf16.msra.mxu1 %v3208_v37  ;;  %1141 = vmatprep.mubr.bf16.mxu1 %v584_v22  ;;  %v3228_v37 = vld [vmem:[%s3905_s3 + $0x48] sm:$0xff]  }
 0x107   : > { %2894 = vmatprep.subr.bf16.mxu1 %v3209_v38  ;;  %2961 = vmatprep.mubr.msk.bf16.mxu0 %vm1187_vm1, %v3219_v54  ;;  %v3229_v38 = vld [vmem:[%s3905_s3 + $0x50] sm:$0xff]  }
 0x10a   : > { %2895 = vmatpush3.bf16.msra.mxu1 %v3210_v39 }
 0x10b   : > { %2896 = vmatprep.subr.bf16.mxu1 %v3211_v40  ;;  %v3230_v40 = vld [vmem:[%s3905_s3 + $0x58] sm:$0xff]  }
 0x10e   : > { %2897 = vmatpush3.bf16.msra.mxu1 %v3212_v41  ;;  %v3231_v41 = vld [vmem:[%s3905_s3 + $0x60] sm:$0xff]  }
 0x10f   : > { %2898 = vmatprep.subr.bf16.mxu1 %v3213_v42 }
 0x112   : > { %2899 = vmatpush3.bf16.msra.mxu1 %v3214_v43  ;;  %v3232_v43 = vld [vmem:[%s3905_s3 + $0x68] sm:$0xff]  }
 0x113   : > { %2900 = vmatprep.subr.bf16.mxu1 %v3215_v44  ;;  %v3233_v44 = vld [vmem:[%s3905_s3 + $0x70] sm:$0xff]  }
 0x116   : > { %2901 = vmatpush3.bf16.msra.mxu1 %v3216_v45 }
 0x117   : > { %2902 = vmatprep.subr.bf16.mxu1 %v3217_v46  ;;  %v3234_v46 = vld [vmem:[%s3905_s3 + $0x78] sm:$0xff]  }
 0x11a   : > { %2903 = vmatpush3.bf16.msra.mxu1 %v3218_v47  ;;  %v3235_v47 = vld [vmem:[%s3905_s3 + $0x80] sm:$0xff]  }
 0x11d   : > { %1142 = vmatmul.mubr.bf16.vlgmr.msra.gmra.mrb[8].mxu1 %v583_v21 }
 0x11e   : > { %1149 = vmatprep.mubr.bf16.mxu1 %v586_v36 }
 0x125   : > { %1150 = vmatmul.mubr.bf16.gmra.mrb[12].mxu1 %v585_v35  ;;  %v3227_v35 = vld [vmem:[%s3905_s3 + $0x40] sm:$0xff]  }
 0x1d0   : > { %v1037_v48 = vpop.f32.mrb[0].mxu1  ;;  %v1090_v49 = vpop.f32.mrb[8].mxu0 }
 0x1d1   : > { %v1039_v50 = vpop.f32.mrb[1].mxu1  ;;  %v1092_v51 = vpop.f32.mrb[9].mxu0 }
 0x1d2   : > { %v1041_v52 = vpop.f32.mrb[2].mxu1  ;;  %v1094_v53 = vpop.f32.mrb[10].mxu0 }
 0x1d3   : > { %v1162_v55 = vpack.c.bf16 %v1041_v52, %v1037_v48  ;;  %v3635_v56 = vpack.c.bf16 %v1094_v53, %v1090_v49  ;;  %v1043_v57 = vpop.f32.mrb[3].mxu1  ;;  %v1096_v58 = vpop.f32.mrb[11].mxu0  ;;  %v3236_v48 = vld [vmem:[%s3905_s3 + $0x88] sm:$0xff]   ;;  %v3309_v49 = vmov 0.0  }
 0x1d4   : > { %v1313_v59 = vpack.c.bf16 %v1043_v57, %v1039_v50  ;;  %v3637_v60 = vpack.c.bf16 %v1096_v58, %v1092_v51  ;;  %3029 = vmatprep.subr.bf16.mxu1 %v3309_v49  ;;  %3033 = vmatprep.mubr.msk.bf16.mxu1 %vm3310_vm2, %v3309_v49 }
 0x1d5   : > { %1181 = vrot.lane.b32.xlu0 %v1162_v55, %s3308_s23 }
 0x1d6   : > { %1401 = vrot.lane.b32.xlu1 %v1313_v59, %s3308_s23 }
 0x1d8   : > { %v1047_v61 = vpop.f32.mrb[4].mxu1  ;;  %v1100_v62 = vpop.f32.mrb[12].mxu0 }
 0x1d9   : > { %v1049_v63 = vpop.f32.mrb[5].mxu1  ;;  %v1102_v1 = vpop.f32.mrb[13].mxu0 }
 0x1da   : > { %v1051_v2 = vpop.f32.mrb[6].mxu1  ;;  %v1104_v3 = vpop.f32.mrb[14].mxu0 }
 0x1db   : > { %v1163_v4 = vpack.c.bf16 %v1051_v2, %v1047_v61  ;;  %v3642_v5 = vpack.c.bf16 %v1104_v3, %v1100_v62  ;;  %v1053_v6 = vpop.f32.mrb[7].mxu1  ;;  %v1106_v7 = vpop.f32.mrb[15].mxu0  ;;  %v3237_v61 = vld [vmem:[%s3906_s4] sm:$0xff]   ;;  %v3238_v3 = vld [vmem:[%s3906_s4 + $0x8] sm:$0xff]  }
 0x1dc   : > { %v1314_v8 = vpack.c.bf16 %v1053_v6, %v1049_v63  ;;  %v3644_v9 = vpack.c.bf16 %v1106_v7, %v1102_v1  ;;  %v3240_v62 = vld [vmem:[%s3907_s5] ss:$16 sps:$4 sm:$0xff]   ;;  %v3245_v63 = vld [vmem:[%s3907_s5 + $0x24] ss:$16 sps:$4 sm:$0xff]  }
 0x1dd   : > { %1183 = vrot.lane.b32.xlu0 %v1163_v4, %s3308_s23  ;;  %v3243_v1 = vld [vmem:[%s3907_s5 + $0x20] ss:$16 sps:$4 sm:$0xff]   ;;  %v3248_v2 = vld [vmem:[%s3907_s5 + $0x44] ss:$16 sps:$4 sm:$0xff]  }
 0x1de   : > { %1403 = vrot.lane.b32.xlu1 %v1314_v8, %s3308_s23  ;;  %v3251_v6 = vld [vmem:[%s3907_s5 + $0x64] ss:$16 sps:$4 sm:$0xff]   ;;  %v3249_v7 = vld [vmem:[%s3907_s5 + $0x60] ss:$16 sps:$4 sm:$0xff]  }
 0x1e1   : > { %1559 = vrot.lane.b32.xlu0 %v3635_v56, %s3308_s23 }
 0x1e2   : > { %1561 = vrot.lane.b32.xlu1 %v3642_v5, %s3308_s23 }
 0x1e5   : > { %1717 = vrot.lane.b32.xlu0 %v3637_v60, %s3308_s23 }
 0x1e6   : > { %1719 = vrot.lane.b32.xlu1 %v3644_v9, %s3308_s23 }
 0x1f0   : > { %v2904_v10 = vpop.f32.mrb[8].mxu1 }
 0x1f1   : > { %v2905_v11 = vpop.f32.mrb[9].mxu1 }
 0x1f2   : > { %v2906_v12 = vadd.f32 %v2905_v11, %v2904_v10  ;;  %v2907_v13 = vpop.f32.mrb[10].mxu1  ;;  %v3257_v10 = vld [vmem:[%s3907_s5 + $0xc] ss:$16 sps:$4 sm:$0xff]   ;;  %v3258_v11 = vld [vmem:[%s3908_s6 + $0x28] ss:$16 sps:$4 sm:$0xff]  }
 0x1f3   : > { %v2908_v14 = vpop.f32.mrb[11].mxu1 }
 0x1f4   : > { %v2909_v15 = vadd.f32 %v2908_v14, %v2907_v13  ;;  %v3266_v13 = vld [vmem:[%s3908_s6 + $0x4c] ss:$16 sps:$4 sm:$0xff]   ;;  %v3264_v14 = vld [vmem:[%s3908_s6 + $0x48] ss:$16 sps:$4 sm:$0xff]  }
 0x1f6   : > { %v3656_v16 = vpack.c.bf16 %v2909_v15, %v2906_v12  ;;  %v3260_v12 = vld [vmem:[%s3908_s6 + $0x2c] ss:$16 sps:$4 sm:$0xff]   ;;  %v3270_v15 = vld [vmem:[%s3908_s6 + $0x68] ss:$16 sps:$4 sm:$0xff]  }
 0x1f8   : > { %v2910_v17 = vpop.f32.mrb[12].mxu1 }
 0x1f9   : > { %v2911_v18 = vpop.f32.mrb[13].mxu1 }
 0x1fa   : > { %v2912_v19 = vadd.f32 %v2911_v18, %v2910_v17  ;;  %v2913_v20 = vpop.f32.mrb[14].mxu1 }
 0x1fb   : > { %v2914_v21 = vpop.f32.mrb[15].mxu1 }
 0x1fc   : > { %v2915_v22 = vadd.f32 %v2914_v21, %v2913_v20  ;;  %v3255_v20 = vld [vmem:[%s3907_s5 + $0x8] ss:$16 sps:$4 sm:$0xff]  }
 0x1fe   : > { %v3658_v23 = vpack.c.bf16 %v2915_v22, %v2912_v19 }
 0x247   : > { %v1182_v24 = vpop.permute.xlu0 %1181 }
 0x248   : > { %2957 = vmatprep.subr.bf16.mxu0 %v1182_v24  ;;  %v1402_v30 = vpop.permute.xlu1 %1401 }
 0x249   : > { %2958 = vmatpush3.bf16.msra.mxu0 %v1182_v24  ;;  %v3261_v24 = vld [vmem:[%s3907_s5 + $0x28] ss:$16 sps:$4 sm:$0xff]  }
 0x24f   : > { %v1184_v25 = vpop.permute.xlu0 %1183 }
 0x250   : > { %2959 = vmatprep.subr.bf16.mxu0 %v1184_v25  ;;  %v1404_v33 = vpop.permute.xlu1 %1403 }
 0x251   : > { %2960 = vmatpush3.bf16.msra.mxu0 %v1184_v25  ;;  %v3269_v25 = vld [vmem:[%s3907_s5 + $0x4c] ss:$16 sps:$4 sm:$0xff]  }
 0x252   : > { %2965 = vmatprep.subr.bf16.mxu0 %v1162_v55 }
 0x253   : > { %v1560_v36 = vpop.permute.xlu0 %1559 }
 0x254   : > { %2962 = vmatmul.mubr.msk.bf16.vlgmr.msra.gmra.mrb[16].mxu0 %vm1187_vm1, %v3220_v26  ;;  %v1562_v39 = vpop.permute.xlu1 %1561 }
 0x255   : > { %2966 = vmatpush3.bf16.msra.mxu0 %v1162_v55  ;;  %2969 = vmatprep.mubr.msk.bf16.mxu0 %vm1187_vm1, %v3221_v27 }
 0x256   : > { %2967 = vmatprep.subr.bf16.mxu0 %v1163_v4 }
 0x257   : > { %v1718_v42 = vpop.permute.xlu0 %1717 }
 0x258   : > { %v1720_v45 = vpop.permute.xlu1 %1719 }
 0x259   : > { %2968 = vmatpush3.bf16.msra.mxu0 %v1163_v4  ;;  %v3246_v4 = vld [vmem:[%s3907_s5 + $0x40] ss:$16 sps:$4 sm:$0xff]  }
 0x25a   : > { %2973 = vmatprep.subr.bf16.mxu0 %v1313_v59 }
 0x260   : > { %2970 = vmatmul.mubr.msk.bf16.vlgmr.msra.gmra.mrb[16].mxu0 %vm1187_vm1, %v3222_v28 }
 0x261   : > { %2974 = vmatpush3.bf16.msra.mxu0 %v1313_v59  ;;  %2977 = vmatprep.mubr.msk.bf16.mxu0 %vm1187_vm1, %v3223_v29 }
 0x262   : > { %2975 = vmatprep.subr.bf16.mxu0 %v1314_v8 }
 0x265   : > { %2976 = vmatpush3.bf16.msra.mxu0 %v1314_v8  ;;  %v3254_v8 = vld [vmem:[%s3908_s6 + $0xc] ss:$16 sps:$4 sm:$0xff]  }
 0x266   : > { %2981 = vmatprep.subr.bf16.mxu0 %v1402_v30 }
 0x26c   : > { %2978 = vmatmul.mubr.msk.bf16.vlgmr.msra.gmra.mrb[16].mxu0 %vm1187_vm1, %v3224_v31 }
 0x26d   : > { %2982 = vmatpush3.bf16.msra.mxu0 %v1402_v30  ;;  %2985 = vmatprep.mubr.msk.bf16.mxu0 %vm1187_vm1, %v3225_v32  ;;  %v3267_v30 = vld [vmem:[%s3907_s5 + $0x48] ss:$16 sps:$4 sm:$0xff]   ;;  %v3275_v32 = vld [vmem:[%s3907_s5 + $0x6c] ss:$16 sps:$4 sm:$0xff]  }
 0x26e   : > { %2983 = vmatprep.subr.bf16.mxu0 %v1404_v33 }
 0x271   : > { %2984 = vmatpush3.bf16.msra.mxu0 %v1404_v33  ;;  %v3273_v33 = vld [vmem:[%s3907_s5 + $0x68] ss:$16 sps:$4 sm:$0xff]  }
 0x272   : > { %2989 = vmatprep.subr.bf16.mxu0 %v3635_v56 }
 0x278   : > { %2986 = vmatmul.mubr.msk.bf16.vlgmr.msra.gmra.mrb[16].mxu0 %vm1187_vm1, %v3226_v34  ;;  %v3278_v34 = vld [vmem:[%s3908_s6 + $0x4] ss:$16 sps:$4 sm:$0xff]  }
 0x279   : > { %2990 = vmatpush3.bf16.msra.mxu0 %v3635_v56  ;;  %2993 = vmatprep.mubr.msk.bf16.mxu0 %vm1187_vm1, %v3227_v35 }
 0x27a   : > { %2991 = vmatprep.subr.bf16.mxu0 %v3642_v5 }
 0x27d   : > { %2992 = vmatpush3.bf16.msra.mxu0 %v3642_v5  ;;  %v3239_v5 = vld [vmem:[%s3906_s4 + $0x10] sm:$0xff]  }
 0x27e   : > { %2997 = vmatprep.subr.bf16.mxu0 %v1560_v36 }
 0x284   : > { %2994 = vmatmul.mubr.msk.bf16.vlgmr.msra.gmra.mrb[16].mxu0 %vm1187_vm1, %v3228_v37 }
 0x285   : > { %2998 = vmatpush3.bf16.msra.mxu0 %v1560_v36  ;;  %3001 = vmatprep.mubr.msk.bf16.mxu0 %vm1187_vm1, %v3229_v38  ;;  %v3276_v38 = vld [vmem:[%s3908_s6] ss:$16 sps:$4 sm:$0xff]  }
 0x286   : > { %2999 = vmatprep.subr.bf16.mxu0 %v1562_v39 }
 0x289   : > { %3000 = vmatpush3.bf16.msra.mxu0 %v1562_v39 }
 0x28a   : > { %3005 = vmatprep.subr.bf16.mxu0 %v3637_v60 }
 0x290   : > { %3002 = vmatmul.mubr.msk.bf16.vlgmr.msra.gmra.mrb[16].mxu0 %vm1187_vm1, %v3230_v40  ;;  %v3281_v40 = vld [vmem:[%s3908_s6 + $0x24] ss:$16 sps:$4 sm:$0xff]  }
 0x291   : > { %3006 = vmatpush3.bf16.msra.mxu0 %v3637_v60  ;;  %3009 = vmatprep.mubr.msk.bf16.mxu0 %vm1187_vm1, %v3231_v41  ;;  %v3242_v60 = vld [vmem:[%s3907_s5 + $0x4] ss:$16 sps:$4 sm:$0xff]  }
 0x292   : > { %3007 = vmatprep.subr.bf16.mxu0 %v3644_v9 }
 0x295   : > { %3008 = vmatpush3.bf16.msra.mxu0 %v3644_v9  ;;  %v3252_v9 = vld [vmem:[%s3908_s6 + $0x8] ss:$16 sps:$4 sm:$0xff]  }
 0x296   : > { %3013 = vmatprep.subr.bf16.mxu0 %v1718_v42 }
 0x29c   : > { %3010 = vmatmul.mubr.msk.bf16.vlgmr.msra.gmra.mrb[16].mxu0 %vm1187_vm1, %v3232_v43 }
 0x29d   : > { %3014 = vmatpush3.bf16.msra.mxu0 %v1718_v42  ;;  %3017 = vmatprep.mubr.msk.bf16.mxu0 %vm1187_vm1, %v3233_v44  ;;  %v3279_v42 = vld [vmem:[%s3908_s6 + $0x20] ss:$16 sps:$4 sm:$0xff]   ;;  %v3284_v44 = vld [vmem:[%s3908_s6 + $0x44] ss:$16 sps:$4 sm:$0xff]  }
 0x29e   : > { %3015 = vmatprep.subr.bf16.mxu0 %v1720_v45 }
 0x2a1   : > { %3016 = vmatpush3.bf16.msra.mxu0 %v1720_v45  ;;  %v3282_v45 = vld [vmem:[%s3908_s6 + $0x40] ss:$16 sps:$4 sm:$0xff]  }
 0x2a2   : > { %3021 = vmatprep.subr.bf16.mxu0 %v3656_v16 }
 0x2a8   : > { %3018 = vmatmul.mubr.msk.bf16.vlgmr.msra.gmra.mrb[16].mxu0 %vm1187_vm1, %v3234_v46  ;;  %v3287_v46 = vld [vmem:[%s3908_s6 + $0x64] ss:$16 sps:$4 sm:$0xff]  }
 0x2a9   : > { %3022 = vmatpush3.bf16.msra.mxu0 %v3656_v16  ;;  %3025 = vmatprep.mubr.msk.bf16.mxu0 %vm1187_vm1, %v3235_v47  ;;  %v3272_v16 = vld [vmem:[%s3908_s6 + $0x6c] ss:$16 sps:$4 sm:$0xff]   ;;  %v3285_v47 = vld [vmem:[%s3908_s6 + $0x60] ss:$16 sps:$4 sm:$0xff]  }
 0x2aa   : > { %3023 = vmatprep.subr.bf16.mxu0 %v3658_v23 }
 0x2ad   : > { %3024 = vmatpush3.bf16.msra.mxu0 %v3658_v23  ;;  %v3263_v23 = vld [vmem:[%s3907_s5 + $0x2c] ss:$16 sps:$4 sm:$0xff]  }
 0x2ae   : > { %2312 = vmatprep.subr.bf16.mxu0 %v3254_v8 }
 0x2b4   : > { %3026 = vmatmul.mubr.msk.bf16.vlgmr.msra.gmra.mrb[16].mxu0 %vm1187_vm1, %v3236_v48  ;;  %v2381_v48 = vld [vmem:[%s3910_s8] sm:$0xff] }
 0x2b5   : > { %2344 = vmatprep.mubr.bf16.mxu0 %v3307_v0  ;;  %2313 = vmatpush1.bf16.msra.mxu0 %v3252_v9 }
 0x2b6   : > { %2314 = vmatprep.subr.bf16.mxu0 %v3260_v12  ;;  %2385 = vperm.xlu0 %3091, %v2381_v48  }
 0x2b9   : > { %2315 = vmatpush1.bf16.msra.mxu0 %v3258_v11 }
 0x2ba   : > { %2316 = vmatprep.subr.bf16.mxu0 %v3266_v13 }
 0x2bd   : > { %2317 = vmatpush1.bf16.msra.mxu0 %v3264_v14 }
 0x2be   : > { %2318 = vmatprep.subr.bf16.mxu0 %v3272_v16 }
 0x2c1   : > { %2319 = vmatpush1.bf16.msra.mxu0 %v3270_v15 }
 0x387   : > { %v3027_v50 = vpop.f32.mrb[16].mxu0 }
 0x388   : > { %v1839_v51 = vpop.f32.mrb[17].mxu0  ;;  %v1860_v53 = vmax.f32 %v3027_v50, 0.0  ;;  %v2496_v50 = vld [vmem:[%s3911_s9 + $0x8] sm:$0xff] }
 0x389   : > { %v3028_v52 = vpop.f32.mrb[18].mxu0  ;;  %v1858_v56 = vmax.f32 %v1839_v51, 0.0  ;;  %v2495_v51 = vld [vmem:[%s3911_s9] sm:$0xff]  ;;  %2504 = vperm.xlu0 %3091, %v2496_v50  }
 0x38a   : > { %v1861_v54 = vmax.f32 %v3028_v52, 0.0  ;;  %v1842_v55 = vpop.f32.mrb[19].mxu0 }
 0x38b   : > { %v1859_v57 = vmax.f32 %v1842_v55, 0.0 }
 0x38c   : > { %v1869_v58 = vpack.c.bf16 %v1861_v54, %v1860_v53 }
 0x38d   : > { %v1868_v59 = vpack.c.bf16 %v1859_v57, %v1858_v56 }
 0x38f   : > { %3030 = vmatpush3.bf16.msra.mxu1 %v1868_v59 }
 0x390   : > { %3031 = vmatprep.subr.bf16.mxu1 %v3309_v49 }
 0x393   : > { %3032 = vmatpush3.bf16.msra.mxu1 %v1869_v58 }
 0x394   : > { %2055 = vmatprep.subr.bf16.mxu1 %v3242_v60 }
 0x396   : > { %3034 = vmatmul.mubr.msk.bf16.vlgmr.msra.gmra.mrb[16].mxu1 %vm1187_vm1, %v3237_v61 }
 0x397   : > { %3037 = vmatprep.mubr.msk.bf16.mxu1 %vm3310_vm2, %v3309_v49  ;;  %2056 = vmatpush1.bf16.msra.mxu1 %v3240_v62 }
 0x398   : > { %2057 = vmatprep.subr.bf16.mxu1 %v3245_v63 }
 0x39b   : > { %2058 = vmatpush1.bf16.msra.mxu1 %v3243_v1 }
 0x39c   : > { %2059 = vmatprep.subr.bf16.mxu1 %v3248_v2 }
 0x39e   : > { %3038 = vmatmul.mubr.msk.bf16.gmra.mrb[20].mxu1 %vm1187_vm1, %v3238_v3 }
 0x39f   : > { %3041 = vmatprep.mubr.msk.bf16.mxu1 %vm3310_vm2, %v3309_v49  ;;  %2060 = vmatpush1.bf16.msra.mxu1 %v3246_v4  ;;  %v2382_v49 = vld [vmem:[%s3910_s8 + $0x8] sm:$0xff] }
 0x3a0   : > { %2061 = vmatprep.subr.bf16.mxu1 %v3251_v6  ;;  %2390 = vperm.xlu1 %3092, %v2382_v49  }
 0x3a3   : > { %2062 = vmatpush1.bf16.msra.mxu1 %v3249_v7 }
 0x3a4   : > { %2106 = vmatprep.subr.bf16.mxu1 %v3257_v10  ;;  %2499 = vperm.xlu1 %3092, %v2495_v51  }
 0x3a6   : > { %3042 = vmatmul.mubr.msk.bf16.gmra.mrb[24].mxu1 %vm1187_vm1, %v3239_v5 }
 0x3a7   : > { %2087 = vmatprep.mubr.bf16.mxu1 %v3307_v0 }
 0x469   : > { %v1928_v17 = vpop.f32.mrb[16].mxu1 }
 0x46a   : > { %v3035_v18 = vpop.f32.mrb[17].mxu1 }
 0x46b   : > { %v1931_v19 = vpop.f32.mrb[18].mxu1 }
 0x46c   : > { %v1967_v21 = vpack.c.bf16 %v1931_v19, %v1928_v17  ;;  %v3036_v22 = vpop.f32.mrb[19].mxu1 }
 0x46e   : > { %2858 = vmatmul.mubr.msk.bf16.vlgmr.msra.gmra.mrb[28].mxu1 %vm419_vm0, %v1967_v21 }
 0x46f   : > { %2107 = vmatpush1.bf16.msra.mxu1 %v3255_v20  ;;  %2097 = vmatprep.mubr.bf16.mxu1 %v3307_v0  ;;  %v3288_v20 = vld [vmem:[%s3909_s7] sm:$0xff]  }
 0x470   : > { %2108 = vmatprep.subr.bf16.mxu1 %v3263_v23 }
 0x471   : > { %v1936_v26 = vpop.f32.mrb[20].mxu1 }
 0x472   : > { %v1968_v27 = vpack.c.bf16 %v1936_v26, %v1936_v26  ;;  %v3039_v28 = vpop.f32.mrb[21].mxu1 }
 0x473   : > { %v1939_v29 = vpop.f32.mrb[22].mxu1  ;;  %2109 = vmatpush1.bf16.msra.mxu1 %v3261_v24 }
 0x474   : > { %v3040_v31 = vpop.f32.mrb[23].mxu1  ;;  %2110 = vmatprep.subr.bf16.mxu1 %v3269_v25 }
 0x476   : > { %2859 = vmatmul.mubr.msk.bf16.gmra.mrb[32].mxu1 %vm419_vm0, %v1968_v27 }
 0x477   : > { %2111 = vmatpush1.bf16.msra.mxu1 %v3267_v30  ;;  %2138 = vmatprep.mubr.bf16.mxu1 %v3307_v0 }
 0x478   : > { %2112 = vmatprep.subr.bf16.mxu1 %v3275_v32 }
 0x479   : > { %v1944_v35 = vpop.f32.mrb[24].mxu1 }
 0x47a   : > { %v2173_v36 = vpack.c.bf16 %v1944_v35, %v1939_v29  ;;  %v3043_v37 = vpop.f32.mrb[25].mxu1 }
 0x47b   : > { %2113 = vmatpush1.bf16.msra.mxu1 %v3273_v33  ;;  %v1947_v39 = vpop.f32.mrb[26].mxu1  ;;  %v2391_v37 = vpop.permute.xlu1 %2390 }
 0x47c   : > { %2880 = vmatmul.mubr.msk.bf16.vlgmr.msra.gmra.mrb[20].mxu0 %vm419_vm0, %v2173_v36  ;;  %2261 = vmatprep.subr.bf16.mxu1 %v3278_v34  ;;  %v3044_v41 = vpop.f32.mrb[27].mxu1  ;;  %v2174_v43 = vpack.c.bf16 %v1947_v39, %v1947_v39 }
 0x47d   : > { %2354 = vmatprep.mubr.bf16.mxu0 %v3307_v0 }
 0x47e   : > { %2860 = vmatmul.mubr.msk.bf16.vlgmr.msra.gmra.mrb[36].mxu1 %vm419_vm0, %v1967_v21 }
 0x47f   : > { %2262 = vmatpush1.bf16.msra.mxu1 %v3276_v38  ;;  %2148 = vmatprep.mubr.bf16.mxu1 %v3307_v0  ;;  %v2386_v38 = vpop.permute.xlu0 %2385 }
 0x480   : > { %2263 = vmatprep.subr.bf16.mxu1 %v3281_v40 }
 0x483   : > { %2264 = vmatpush1.bf16.msra.mxu1 %v3279_v42  ;;  %v2505_v50 = vpop.permute.xlu0 %2504 }
 0x484   : > { %2265 = vmatprep.subr.bf16.mxu1 %v3284_v44  ;;  %2881 = vmatmul.mubr.msk.bf16.gmra.mrb[24].mxu0 %vm419_vm0, %v2174_v43  ;;  %v2500_v44 = vpop.permute.xlu1 %2499 }
 0x485   : > { %2476 = vmatprep.mubr.bf16.mxu0 %v3307_v0 }
 0x486   : > { %2861 = vmatmul.mubr.msk.bf16.gmra.mrb[40].mxu1 %vm419_vm0, %v1968_v27 }
 0x487   : > { %2266 = vmatpush1.bf16.msra.mxu1 %v3282_v45  ;;  %2293 = vmatprep.mubr.bf16.mxu1 %v3307_v0 }
 0x488   : > { %2267 = vmatprep.subr.bf16.mxu1 %v3287_v46 }
 0x48b   : > { %2268 = vmatpush1.bf16.msra.mxu1 %v3285_v47 }
 0x48e   : > { %2878 = vmatmul.mubr.msk.bf16.vlgmr.msra.gmra.mrb[44].mxu1 %vm419_vm0, %v2173_v36 }
 0x48f   : > { %2303 = vmatprep.mubr.bf16.mxu1 %v3307_v0 }
 0x496   : > { %2879 = vmatmul.mubr.msk.bf16.gmra.mrb[48].mxu1 %vm419_vm0, %v2174_v43 }
 0x497   : > { %2433 = vmatprep.mubr.bf16.mxu1 %v3307_v0 }
 0x541   : > { %v2089_v0 = vpop.f32.mrb[28].mxu1 }
 0x542   : > { %v2091_v52 = vpop.f32.mrb[29].mxu1 }
 0x543   : > { %v2093_v53 = vpop.f32.mrb[30].mxu1 }
 0x544   : > { %v2095_v54 = vpop.f32.mrb[31].mxu1 }
 0x549   : > { %v2099_v55 = vpop.f32.mrb[32].mxu1 }
 0x54a   : > { %v2101_v56 = vpop.f32.mrb[33].mxu1 }
 0x54b   : > { %v2103_v57 = vpop.f32.mrb[34].mxu1 }
 0x54c   : > { %v2104_v58 = vpop.f32.mrb[35].mxu1 }
 0x54f   : > { %v2346_v59 = vpop.f32.mrb[20].mxu0 }
 0x550   : > { %v2348_v60 = vpop.f32.mrb[21].mxu0 }
 0x551   : > { %v2140_v61 = vpop.f32.mrb[36].mxu1  ;;  %v2350_v62 = vpop.f32.mrb[22].mxu0 }
 0x552   : > { %v2365_v63 = vmul.f32 %v2346_v59, %v2140_v61  ;;  %v2142_v1 = vpop.f32.mrb[37].mxu1  ;;  %v2352_v2 = vpop.f32.mrb[23].mxu0 }
 0x553   : > { %v2366_v3 = vmul.f32 %v2348_v60, %v2142_v1  ;;  %v2144_v4 = vpop.f32.mrb[38].mxu1 }
 0x554   : > { %v2369_v5 = vmul.f32 %v2350_v62, %v2144_v4  ;;  %v2146_v6 = vpop.f32.mrb[39].mxu1 }
 0x555   : > { %v2370_v7 = vmul.f32 %v2352_v2, %v2146_v6 }
 0x556   : > { %v2375_v8 = vpack.c.bf16 %v2369_v5, %v2365_v63 }
 0x557   : > { %v2376_v9 = vpack.c.bf16 %v2370_v7, %v2366_v3  ;;  %v2356_v10 = vpop.f32.mrb[24].mxu0 }
 0x558   : > { %v2358_v11 = vpop.f32.mrb[25].mxu0 }
 0x559   : > { %v2150_v12 = vpop.f32.mrb[40].mxu1  ;;  %2444 = vmatprep.subr.bf16.mxu0 %v2376_v9  ;;  %v2360_v13 = vpop.f32.mrb[26].mxu0 }
 0x55a   : > { %v2379_v14 = vpack.c.bf16 %v2356_v10, %v2150_v12  ;;  %v2152_v15 = vpop.f32.mrb[41].mxu1  ;;  %2445 = vmatpush1.bf16.msra.mxu0 %v2375_v8  ;;  %v2361_v16 = vpop.f32.mrb[27].mxu0 }
 0x55b   : > { %v2380_v17 = vpack.c.bf16 %v2358_v11, %v2152_v15  ;;  %v2154_v18 = vpop.f32.mrb[42].mxu1 }
 0x55c   : > { %v2155_v19 = vpop.f32.mrb[43].mxu1 }
 0x55d   : > { %2446 = vmatprep.subr.bf16.mxu0 %v2380_v17 }
 0x55e   : > { %2447 = vmatpush1.bf16.msra.mxu0 %v2379_v14 }
 0x561   : > { %v2295_v21 = vpop.f32.mrb[44].mxu1  ;;  %2884 = vmatmul.mubr.msk.bf16.vlgmr.msra.gmra.mrb[28].mxu0 %vm1187_vm1, %v3288_v20 }
 0x562   : > { %v2363_v22 = vmul.f32 %v2295_v21, %v2089_v0  ;;  %v2297_v23 = vpop.f32.mrb[45].mxu1 }
 0x563   : > { %v2364_v24 = vmul.f32 %v2297_v23, %v2091_v52  ;;  %v2299_v25 = vpop.f32.mrb[46].mxu1 }
 0x564   : > { %v2367_v26 = vmul.f32 %v2299_v25, %v2093_v53  ;;  %v2301_v27 = vpop.f32.mrb[47].mxu1 }
 0x565   : > { %v2368_v28 = vmul.f32 %v2301_v27, %v2095_v54 }
 0x566   : > { %v2373_v29 = vpack.c.bf16 %v2367_v26, %v2363_v22 }
 0x567   : > { %v2374_v30 = vpack.c.bf16 %v2368_v28, %v2364_v24 }
 0x569   : > { %v2305_v31 = vpop.f32.mrb[48].mxu1  ;;  %2401 = vmatprep.subr.bf16.mxu1 %v2374_v30 }
 0x56a   : > { %v2377_v32 = vpack.c.bf16 %v2305_v31, %v2099_v55  ;;  %v2307_v33 = vpop.f32.mrb[49].mxu1  ;;  %2402 = vmatpush1.bf16.msra.mxu1 %v2373_v29 }
 0x56b   : > { %v2378_v34 = vpack.c.bf16 %v2307_v33, %v2101_v56  ;;  %v2309_v35 = vpop.f32.mrb[50].mxu1 }
 0x56c   : > { %v2310_v36 = vpop.f32.mrb[51].mxu1 }
 0x56d   : > { %2403 = vmatprep.subr.bf16.mxu1 %v2378_v34 }
 0x56e   : > { %2404 = vmatpush1.bf16.msra.mxu1 %v2377_v32 }
 0x571   : > { %2883 = vmatmul.mubr.msk.bf16.vlgmr.msra.gmra.mrb[52].mxu1 %vm1187_vm1, %v3288_v20 }
 0x634   : > { %v2478_v39 = vpop.f32.mrb[28].mxu0 }
 0x635   : > { %v2480_v40 = vpop.f32.mrb[29].mxu0  ;;  %v2479_v41 = vadd.f32 %v2478_v39, %v2386_v38 }
 0x636   : > { %v2482_v42 = vpop.f32.mrb[30].mxu0  ;;  %v2481_v43 = vadd.f32 %v2480_v40, %v2386_v38 }
 0x637   : > { %v2489_v45 = vmax.f32 %v2479_v41, 0.0  ;;  %v2483_v46 = vadd.f32 %v2482_v42, %v2391_v37  ;;  %v2484_v47 = vpop.f32.mrb[31].mxu0 }
 0x638   : > { %v2490_v48 = vmax.f32 %v2481_v43, 0.0  ;;  %v2485_v49 = vadd.f32 %v2484_v47, %v2391_v37 }
 0x639   : > { %v2493_v51 = vmax.f32 %v2483_v46, 0.0  ;;  %v2509_v0 = vmul.f32 %v2500_v44, %v2489_v45 }
 0x63a   : > { %v2494_v52 = vmax.f32 %v2485_v49, 0.0  ;;  %v2510_v53 = vmul.f32 %v2500_v44, %v2490_v48 }
 0x63b   : > { %v2513_v54 = vmul.f32 %v2505_v50, %v2493_v51 }
 0x63c   : > { %v2514_v55 = vmul.f32 %v2505_v50, %v2494_v52 }
 0x63d   : > { %v2529_v56 = vadd.f32 %v2513_v54, %v2509_v0 }
 0x63e   : > { %v2536_v57 = vadd.f32 %v2514_v55, %v2510_v53 }
 0x63f   : > { %v2530_v59 = vrot.slane %v2529_v56, 4 }
 0x640   : > { %v2537_v60 = vrot.slane %v2536_v57, 4 }
 0x641   : > { %v2531_v7 = vadd.f32 %v2530_v59, %v2529_v56 }
 0x642   : > { %v2538_v8 = vadd.f32 %v2537_v60, %v2536_v57 }
 0x643   : > { %v2532_v15 = vrot.slane %v2531_v7, 2 }
 0x644   : > { %v2435_v58 = vpop.f32.mrb[52].mxu1  ;;  %v2539_v16 = vrot.slane %v2538_v8, 2 }
 0x645   : > { %v2437_v61 = vpop.f32.mrb[53].mxu1  ;;  %v2436_v62 = vadd.f32 %v2435_v58, %v2386_v38  ;;  %v2533_v21 = vadd.f32 %v2532_v15, %v2531_v7 }
 0x646   : > { %v2438_v63 = vadd.f32 %v2437_v61, %v2386_v38  ;;  %v2439_v1 = vpop.f32.mrb[54].mxu1  ;;  %v2540_v22 = vadd.f32 %v2539_v16, %v2538_v8 }
 0x647   : > { %v2487_v2 = vmax.f32 %v2436_v62, 0.0  ;;  %v2440_v3 = vadd.f32 %v2439_v1, %v2391_v37  ;;  %v2441_v4 = vpop.f32.mrb[55].mxu1  ;;  %v2534_v27 = vrot.slane %v2533_v21, 1 }
 0x648   : > { %v2488_v5 = vmax.f32 %v2438_v63, 0.0  ;;  %v2442_v6 = vadd.f32 %v2441_v4, %v2391_v37  ;;  %v2541_v28 = vrot.slane %v2540_v22, 1 }
 0x649   : > { %v2491_v9 = vmax.f32 %v2440_v3, 0.0  ;;  %v2507_v12 = vmul.f32 %v2500_v44, %v2487_v2  ;;  %v2535_v33 = vadd.f32 %v2534_v27, %v2533_v21 }
 0x64a   : > { %v2492_v10 = vmax.f32 %v2442_v6, 0.0  ;;  %v2508_v14 = vmul.f32 %v2500_v44, %v2488_v5  ;;  %v2542_v34 = vadd.f32 %v2541_v28, %v2540_v22 }
 0x64b   : > { %v2511_v11 = vmul.f32 %v2505_v50, %v2491_v9 }
 0x64c   : > { %v2512_v13 = vmul.f32 %v2505_v50, %v2492_v10  ;;  %v2544_v38 = vmax.f32 %v2535_v33, %v2542_v34 }
 0x64d   : > { %v2515_v17 = vadd.f32 %v2511_v11, %v2507_v12 }
 0x64e   : > { %v2522_v18 = vadd.f32 %v2512_v13, %v2508_v14 }
 0x64f   : > { %v2516_v19 = vrot.slane %v2515_v17, 4 }
 0x650   : > { %v2523_v20 = vrot.slane %v2522_v18, 4 }
 0x651   : > { %v2517_v23 = vadd.f32 %v2516_v19, %v2515_v17 }
 0x652   : > { %v2524_v24 = vadd.f32 %v2523_v20, %v2522_v18 }
 0x653   : > { %v2518_v25 = vrot.slane %v2517_v23, 2 }
 0x654   : > { %v2525_v26 = vrot.slane %v2524_v24, 2 }
 0x655   : > { %v2519_v29 = vadd.f32 %v2518_v25, %v2517_v23 }
 0x656   : > { %v2526_v30 = vadd.f32 %v2525_v26, %v2524_v24 }
 0x657   : > { %v2520_v31 = vrot.slane %v2519_v29, 1 }
 0x658   : > { %v2527_v32 = vrot.slane %v2526_v30, 1 }
 0x659   : > { %v2521_v35 = vadd.f32 %v2520_v31, %v2519_v29 }
 0x65a   : > { %v2528_v36 = vadd.f32 %v2527_v32, %v2526_v30 }
 0x65c   : > { %v2543_v37 = vmax.f32 %v2521_v35, %v2528_v36 }
 0x65e   : > { %v2545_v39 = vmax.f32 %v2543_v37, %v2544_v38 }
 0x660   : > { %2546 = vmax.xlane.f32.xlu1 %v2545_v39 }
 0x6ed   : > { %v2547_v40 = vpop.xlane.xlu1 %2546 }
 0x6ee   : > { %3077 = vpush %v2547_v40 }
 0x71f   : > { %s3078_s18 = spop %3077 }
 0x720   : > { %v2549_v41 = vstv %s3078_s18 }
 0x721   : > { %v2550_v42 = vsub.f32 %v2521_v35, %v2549_v41  ;;  %v2551_v43 = vsub.f32 %v2528_v36, %v2549_v41  ;;  %v2552_v45 = vsub.f32 %v2535_v33, %v2549_v41  ;;  %v2553_v47 = vsub.f32 %v2542_v34, %v2549_v41 }
 0x723   : > { %v2554_v44 = vmul.f32 1.442695, %v2550_v42  ;;  %v2556_v46 = vmul.f32 1.442695, %v2551_v43  ;;  %v2558_v48 = vmul.f32 1.442695, %v2552_v45 }
 0x724   : > { %v2560_v49 = vmul.f32 1.442695, %v2553_v47 }
 0x725   : > { %3289 = vpow2.f32 %v2554_v44 }
 0x726   : > { %3291 = vpow2.f32 %v2556_v46 }
 0x727   : > { %3293 = vpow2.f32 %v2558_v48 }
 0x728   : > { %3295 = vpow2.f32 %v2560_v49 }
 0x72f   : > { %v3290_v50 = vpop.eup %3289 }
 0x730   : > { %2563 = vrot.lane.b32.xlu0 %v3290_v50, %s3308_s23  ;;  %v3292_v51 = vpop.eup %3291 }
 0x731   : > { %v3294_v0 = vpop.eup %3293  ;;  %v2569_v53 = vmul.f32 2.0, %v3292_v51  ;;  %v2580_v7 = vmul.f32 3.0, %v3292_v51 }
 0x732   : > { %v3296_v52 = vpop.eup %3295  ;;  %v2583_v2 = vmul.f32 4.0, %v3294_v0  ;;  %v2594_v11 = vmul.f32 5.0, %v3294_v0 }
 0x733   : > { %v2597_v3 = vmul.f32 6.0, %v3296_v52  ;;  %v2608_v14 = vmul.f32 7.0, %v3296_v52 }
 0x734   : > { %2576 = vrot.lane.b32.xlu0 %v3292_v51, %s3308_s23 }
 0x738   : > { %2590 = vrot.lane.b32.xlu0 %v3294_v0, %s3308_s23 }
 0x73c   : > { %2604 = vrot.lane.b32.xlu0 %v3296_v52, %s3308_s23 }
 0x740   : > { %2571 = vrot.lane.b32.xlu0 %v2569_v53, %s3308_s23 }
 0x7a2   : > { %v2564_v54 = vpop.permute.xlu0 %2563 }
 0x7a3   : > { %v2566_v55 = vadd.f32 %v3290_v50, %v2564_v54 }
 0x7a5   : > { %v2568_v56 = vadd.f32 %v3292_v51, %v2566_v55 }
 0x7a6   : > { %v2577_v57 = vpop.permute.xlu0 %2576 }
 0x7a7   : > { %v2579_v58 = vadd.f32 %v2577_v57, %v2568_v56 }
 0x7a9   : > { %v2582_v59 = vadd.f32 %v3294_v0, %v2579_v58 }
 0x7aa   : > { %v2591_v60 = vpop.permute.xlu0 %2590 }
 0x7ab   : > { %v2593_v61 = vadd.f32 %v2591_v60, %v2582_v59 }
 0x7ad   : > { %v2596_v62 = vadd.f32 %v3296_v52, %v2593_v61 }
 0x7ae   : > { %v2605_v63 = vpop.permute.xlu0 %2604 }
 0x7af   : > { %v2607_v1 = vadd.f32 %v2605_v63, %v2596_v62 }
 0x7b1   : > { %2611 = vrot.lane.b32.xlu0 %v2607_v1, %s3308_s23 }
 0x7b2   : > { %v2572_v4 = vpop.permute.xlu0 %2571 }
 0x7b3   : > { %v2574_v5 = vadd.f32 %v3290_v50, %v2572_v4 }
 0x7b5   : > { %2585 = vrot.lane.b32.xlu0 %v2583_v2, %s3308_s23  ;;  %v2581_v8 = vadd.f32 %v2580_v7, %v2574_v5 }
 0x7b9   : > { %2599 = vrot.lane.b32.xlu0 %v2597_v3, %s3308_s23 }
 0x823   : > { %v2612_v6 = vpop.permute.xlu0 %2611 }
 0x824   : > { %3297 = vrcp.f32 %v2612_v6 }
 0x827   : > { %v2586_v9 = vpop.permute.xlu0 %2585 }
 0x828   : > { %v2588_v10 = vadd.f32 %v2586_v9, %v2581_v8 }
 0x82a   : > { %v2595_v12 = vadd.f32 %v2594_v11, %v2588_v10 }
 0x82b   : > { %v2600_v13 = vpop.permute.xlu0 %2599 }
 0x82c   : > { %v2602_v15 = vadd.f32 %v2600_v13, %v2595_v12 }
 0x82e   : > { %v3298_v16 = vpop.eup %3297  ;;  %v2609_v17 = vadd.f32 %v2608_v14, %v2602_v15 }
 0x830   : > { %v2615_v18 = vmul.f32 %v3298_v16, %v2609_v17 }
 0x832   : > { %2617 = vrot.lane.b32.xlu0 %v2615_v18, %s3308_s23 }
 0x8a4   : > { %v2618_v19 = vpop.permute.xlu0 %2617 }
 0x8a5   : > { %2621 = vst.msk [vmem:[%s355_s21] sm:$0x1] %vm2620_vm3, %v2618_v19 }
 0x8a6 PF: > { %s20_s13 = sadd.s32 1, %s3305_s13  }
 0x8a7   : > { %p17_p4 = scmp.ge.s32.totalorder %s20_s13, 4  }
 0x8a9   :  { %19 = sbr.rel (!%p17_p4) target bundleno = 1 (0x1), region = 98 }

</bundles_post_ra>
